<compile_context>
chip_gen: v7x
topology: tpu7x:2x2x1
jax: 0.10.0
libtpu: 0.0.40
codegen_flags: <defaults>
</compile_context>

<pallas_src>
import jax
import jax.numpy as jnp
from jax.experimental import pallas as pl
from jax.experimental.pallas import tpu as pltpu

NUM_TYPE = 5
NUM_MAG = 1

_COMPILER_PARAMS = pltpu.CompilerParams(
    dimension_semantics=("parallel",),          # batch blocks shard across TCs (v7x)
    vmem_limit_bytes=32 * 1024 * 1024,          # safe on v5e/v6e/v7x at these sizes
)


def _round_up(x, m):
    return ((x + m - 1) // m) * m


# ----------------------------- Pallas kernel ------------------------------

def fused_generator_kernel(xcol_ref, img_ref, pool_ref, wc_ref, bc_ref,
                           wh_ref, bh_ref, g_ref, out_ref, alt_ref):
    """Fused backbone + policy heads + quantize path for one batch block.

    Feature-major layout: batch*spatial (and later just batch) on the lane
    axis, features/types on sublanes -> lane-dense loads, matmuls and stores.

    xcol_ref : (1, 9C, BBLK*HW)   im2col slab, taps folded into contraction
    img_ref  : (1, BBLK, C*HW)    raw image, flattened NCHW per row
    pool_ref : (BBLK*HW, BBLK)    block-diagonal average-pool matrix (1/HW)
    wc_ref   : (hidden, 9C)       conv weight (channel-dup folded in)
    bc_ref   : (hidden, 1)
    wh_ref   : (6, hidden)        [5 type rows | 1 mag row]
    bh_ref   : (6, 1)
    g_ref    : (1, 5, BBLK)       Gumbel noise for the multinomial sample
    out_ref  : (1, 4, BBLK)       packed [log_prob, entropy, type_action, mag]
    alt_ref  : (1, BBLK, C*HW)    quantized + renormalized image
    """
    # ---- conv stem as one MXU matmul + bias + ReLU -------------------------
    acc = jnp.dot(wc_ref[...], xcol_ref[0],
                  preferred_element_type=jnp.float32)        # (hidden, BBLK*HW)
    acc = jnp.maximum(acc + bc_ref[...], 0.0)

    # ---- global average pool via block-diagonal pooling matmul -------------
    feat = jnp.dot(acc, pool_ref[...],
                   preferred_element_type=jnp.float32)       # (hidden, BBLK)

    # ---- fused FC heads: [5 type logits | 1 mag logit] ---------------------
    logits = jnp.dot(wh_ref[...], feat,
                     preferred_element_type=jnp.float32) + bh_ref[...]  # (6, BBLK)
    tl = logits[:NUM_TYPE, :]                                # (5, BBLK)
    ml = logits[NUM_TYPE:, :]                                # (1, BBLK)

    # --- type head: softmax / log_softmax / entropy (reduce over sublanes) --
    m = jnp.max(tl, axis=0, keepdims=True)
    z = tl - m
    ez = jnp.exp(z)
    denom = jnp.sum(ez, axis=0, keepdims=True)
    probs = ez / denom
    lp = z - jnp.log(denom)                                  # log_softmax
    ent_t = -jnp.sum(lp * probs, axis=0, keepdims=True)      # (1, BBLK)

    # multinomial(probs) via Gumbel-max; deterministic first-index tie-break
    score = lp + g_ref[0]                                    # (5, BBLK)
    best = jnp.max(score, axis=0, keepdims=True)
    idx = jax.lax.broadcasted_iota(jnp.int32, score.shape, 0).astype(jnp.float32)
    first = jnp.min(jnp.where(score >= best, idx, jnp.float32(NUM_TYPE)),
                    axis=0, keepdims=True)                   # (1, BBLK) action
    onehot = (idx == first).astype(jnp.float32)
    sel_lp_t = jnp.sum(onehot * lp, axis=0, keepdims=True)   # (1, BBLK)

    # --- mag head: sigmoid path; stable log-sigmoid; entropy = -p*log(p) ----
    lp_m = jnp.minimum(ml, 0.0) - jnp.log(1.0 + jnp.exp(-jnp.abs(ml)))
    p_m = jnp.exp(lp_m)                                      # sigmoid(ml)
    ent_m = -(lp_m * p_m)

    out_ref[0] = jnp.concatenate(
        [sel_lp_t + lp_m, ent_t + ent_m, first, p_m], axis=0)   # (4, BBLK)

    # ---- alt_img: uint8 quantize -> ToTensor (/255) -> Normalize(0.5, 0.5) -
    x = img_ref[...]
    u8 = jnp.floor(jnp.clip((x + 1.0) * (0.5 * 255.0), 0.0, 255.0))
    alt_ref[...] = u8 * (2.0 / 255.0) - 1.0


# ------------------------------- wrappers ---------------------------------

def _choose_bblk(b):
    """Batch-block size: amortize per-step cost, keep >=2 grid steps for v7x."""
    if b <= 8:
        return _round_up(b, 8)
    return min(32, _round_up((b + 1) // 2, 8))


def backbone_heads_altimg(img_nchw, params, gumbel):
    """Synthetic Xception stand-in + policy heads + quantize path, one pallas_call."""
    b, c, h, w = img_nchw.shape
    hw = h * w
    chw = c * hw
    hidden = params["conv_w"].shape[-1]

    bblk = _choose_bblk(b)
    b_pad = _round_up(b, bblk)
    nblk = b_pad // bblk

    # Fold torch.cat((img, img), 1) into the conv weight:
    # conv(cat(x, x), W6) == conv(x, W6[:, :, :C] + W6[:, :, C:]).
    w6 = params["conv_w"]                                   # (3, 3, 2C, hidden)
    w3 = w6[:, :, :c, :] + w6[:, :, c:, :]                  # (3, 3, C, hidden)
    wcT = jnp.transpose(w3.reshape(9 * c, hidden))          # (hidden, 9C)
    bcT = params["conv_b"].reshape(hidden, 1)

    whT = jnp.transpose(
        jnp.concatenate([params["type_w"], params["mag_w"]], axis=1))  # (6, hidden)
    bhT = jnp.concatenate([params["type_b"], params["mag_b"]]
                          ).reshape(NUM_TYPE + NUM_MAG, 1)

    # im2col slab built once in XLA (exact 3x3 'same' windows, zero padding);
    # feature-major per block: (nblk, 9C, BBLK*HW).
    x = jnp.transpose(img_nchw, (0, 2, 3, 1))                # (B, H, W, C)
    x = jnp.pad(x, ((0, b_pad - b), (1, 1), (1, 1), (0, 0)))
    taps = [x[:, ki:ki + h, kj:kj + w, :] for ki in range(3) for kj in range(3)]
    xcol = jnp.stack(taps, axis=3).reshape(b_pad, hw, 9 * c)
    xcolT = jnp.transpose(xcol.reshape(nblk, bblk * hw, 9 * c), (0, 2, 1))

    # Raw image for the quantize path, lane-dense (BBLK, C*H*W) blocks.
    img_blk = jnp.pad(img_nchw.reshape(b, chw),
                      ((0, b_pad - b), (0, 0))).reshape(nblk, bblk, chw)

    # Gumbel noise, batch on lanes: (nblk, 5, BBLK).
    g_blk = jnp.transpose(
        jnp.pad(gumbel, ((0, b_pad - b), (0, 0))).reshape(nblk, bblk, NUM_TYPE),
        (0, 2, 1))

    # Constant block-diagonal average-pool matrix (loaded into VMEM once).
    pool = jnp.repeat(jnp.eye(bblk, dtype=jnp.float32), hw, axis=0) * (1.0 / hw)

    out_heads, alt = pl.pallas_call(
        fused_generator_kernel,
        out_shape=(jax.ShapeDtypeStruct((nblk, 4, bblk), jnp.float32),
                   jax.ShapeDtypeStruct((nblk, bblk, chw), jnp.float32)),
        grid=(nblk,),
        in_specs=[
            pl.BlockSpec((1, 9 * c, bblk * hw), lambda i: (i, 0, 0)),
            pl.BlockSpec((1, bblk, chw), lambda i: (i, 0, 0)),
            pl.BlockSpec((bblk * hw, bblk), lambda i: (0, 0)),
            pl.BlockSpec((hidden, 9 * c), lambda i: (0, 0)),
            pl.BlockSpec((hidden, 1), lambda i: (0, 0)),
            pl.BlockSpec((NUM_TYPE + NUM_MAG, hidden), lambda i: (0, 0)),
            pl.BlockSpec((NUM_TYPE + NUM_MAG, 1), lambda i: (0, 0)),
            pl.BlockSpec((1, NUM_TYPE, bblk), lambda i: (i, 0, 0)),
        ],
        out_specs=[
            pl.BlockSpec((1, 4, bblk), lambda i: (i, 0, 0)),
            pl.BlockSpec((1, bblk, chw), lambda i: (i, 0, 0)),
        ],
        compiler_params=_COMPILER_PARAMS,
    )(xcolT, img_blk, pool, wcT, bcT, whT, bhT, g_blk)

    packed = jnp.transpose(out_heads, (0, 2, 1)).reshape(b_pad, 4)[:b]   # (B, 4)
    alt_img = alt.reshape(b_pad, c, h, w)[:b]
    return packed, alt_img


def generator_forward(params, img, label, video, key):
    """Mirrors generator.forward(img, label, video)."""
    del video  # only used inside the (untranslatable) attack-reuse branch

    bsz = img.shape[0]
    u = jax.random.uniform(key, (bsz, NUM_TYPE), jnp.float32,
                           minval=1e-6, maxval=1.0 - 1e-6)
    gumbel = -jnp.log(-jnp.log(u))                        # glue for sampling

    packed, alt_img = backbone_heads_altimg(img, params, gumbel)
    log_prob = packed[:, 0]
    entropy = packed[:, 1]
    type_action = packed[:, 2].astype(jnp.int32)
    mag_action = packed[:, 3]

    # TODO(synk): iterative_fgsm / carlini_wagner / deepfool / black_box_attack
    # and the PIL Image round-trip have no Pallas equivalent; all images take
    # the quantize + Normalize(0.5, 0.5) branch (alt_img above).

    # newlabel: attacked samples keep label 1 (== their label), others keep
    # their label -> identical to label.
    newlabel = label.astype(jnp.int32)
    # typelabel: label==1 -> sampled type (type==4 maps to 4 == type); else 5.
    typelabel = jnp.where(label == 1, type_action, 5).astype(jnp.int32)
    maglabel = mag_action
    return log_prob, entropy, alt_img, newlabel, typelabel, maglabel


def init_params(key, cin=6, hidden=32):
    ks = jax.random.split(key, 4)
    return {
        "conv_w": 0.1 * jax.random.normal(ks[0], (3, 3, cin, hidden), jnp.float32),
        "conv_b": 0.01 * jax.random.normal(ks[1], (hidden,), jnp.float32),
        "type_w": 0.1 * jax.random.normal(ks[2], (hidden, NUM_TYPE), jnp.float32),
        "type_b": jnp.zeros((NUM_TYPE,), jnp.float32),
        "mag_w": 0.1 * jax.random.normal(ks[3], (hidden, NUM_MAG), jnp.float32),
        "mag_b": jnp.zeros((NUM_MAG,), jnp.float32),
    }


if __name__ == "__main__":
    key = jax.random.PRNGKey(0)
    pkey, ikey, skey = jax.random.split(key, 3)
    params = init_params(pkey)

    B, H, W = 2, 16, 16
    img = jax.random.uniform(ikey, (B, 3, H, W), jnp.float32,
                             minval=-1.0, maxval=1.0)
    label = jnp.array([1, 0], dtype=jnp.int32)
    video = jnp.array([0, 0], dtype=jnp.int32)

    outs = generator_forward(params, img, label, video, skey)
    outs = jax.block_until_ready(outs)

    log_prob, entropy, alt_img, newlabel, typelabel, maglabel = outs
    assert log_prob.shape == (B,) and entropy.shape == (B,)
    assert alt_img.shape == img.shape
    assert newlabel.shape == (B,) and typelabel.shape == (B,)
    assert maglabel.shape == (B,)
    assert bool(jnp.all(jnp.isfinite(log_prob)))
    assert bool(jnp.all(jnp.isfinite(entropy)))
    assert bool(jnp.all(jnp.isfinite(alt_img)))
    assert bool(jnp.all((typelabel >= 0) & (typelabel <= 5)))
    assert bool(jnp.all((maglabel >= 0.0) & (maglabel <= 1.0)))
    print("KERNEL_OK")
</pallas_src>

<mosaic_0001>
module attributes {stable_mosaic.version = 11 : i64} {
  func.func @fused_generator_kernel(%arg0: i32, %arg1: memref<1x27x2048xf32, #tpu.memory_space<vmem>>, %arg2: memref<1x8x768xf32, #tpu.memory_space<vmem>>, %arg3: memref<2048x8xf32, #tpu.memory_space<vmem>>, %arg4: memref<32x27xf32, #tpu.memory_space<vmem>>, %arg5: memref<32x1xf32, #tpu.memory_space<vmem>>, %arg6: memref<6x32xf32, #tpu.memory_space<vmem>>, %arg7: memref<6x1xf32, #tpu.memory_space<vmem>>, %arg8: memref<1x5x8xf32, #tpu.memory_space<vmem>>, %arg9: memref<1x4x8xf32, #tpu.memory_space<vmem>>, %arg10: memref<1x8x768xf32, #tpu.memory_space<vmem>>) attributes {dimension_semantics = [#tpu.dimension_semantics<parallel>], iteration_bounds = array<i64: 1>, scalar_prefetch = 0 : i64, scratch_operands = 0 : i64, tpu.core_type = #tpu.core_type<tc>, window_params = [{transform_indices = @transform_0, window_bounds = array<i64: 1, 27, 2048>}, {transform_indices = @transform_1, window_bounds = array<i64: 1, 8, 768>}, {pipeline_mode = #tpu.pipeline_mode<synchronous>, transform_indices = @transform_2, window_bounds = array<i64: 2048, 8>}, {pipeline_mode = #tpu.pipeline_mode<synchronous>, transform_indices = @transform_3, window_bounds = array<i64: 32, 27>}, {pipeline_mode = #tpu.pipeline_mode<synchronous>, transform_indices = @transform_4, window_bounds = array<i64: 32, 1>}, {pipeline_mode = #tpu.pipeline_mode<synchronous>, transform_indices = @transform_5, window_bounds = array<i64: 6, 32>}, {pipeline_mode = #tpu.pipeline_mode<synchronous>, transform_indices = @transform_6, window_bounds = array<i64: 6, 1>}, {transform_indices = @transform_7, window_bounds = array<i64: 1, 5, 8>}, {transform_indices = @transform_8, window_bounds = array<i64: 1, 4, 8>}, {transform_indices = @transform_9, window_bounds = array<i64: 1, 8, 768>}]} {
    %c0 = arith.constant 0 : index
    %c0_0 = arith.constant 0 : index
    %0 = vector.load %arg4[%c0, %c0_0] : memref<32x27xf32, #tpu.memory_space<vmem>>, vector<32x27xf32>
    %c0_1 = arith.constant 0 : index
    %c0_2 = arith.constant 0 : index
    %c0_3 = arith.constant 0 : index
    %1 = vector.load %arg1[%c0_1, %c0_2, %c0_3] : memref<1x27x2048xf32, #tpu.memory_space<vmem>>, vector<1x27x2048xf32>
    %2 = vector.shape_cast %1 : vector<1x27x2048xf32> to vector<27x2048xf32>
    %cst = arith.constant dense<0.000000e+00> : vector<32x2048xf32>
    %3 = tpu.matmul %0, %2, %cst {dimension_numbers = #tpu.dot_dimension_numbers<[1], [0], [0], [1], [0, 0, 1, 1], [], []>} : vector<32x27xf32>, vector<27x2048xf32>, vector<32x2048xf32> -> vector<32x2048xf32>
    %c0_4 = arith.constant 0 : index
    %c0_5 = arith.constant 0 : index
    %4 = vector.load %arg5[%c0_4, %c0_5] : memref<32x1xf32, #tpu.memory_space<vmem>>, vector<32x1xf32>
    %5 = vector.broadcast %4 : vector<32x1xf32> to vector<32x2048xf32>
    %6 = arith.addf %3, %5 : vector<32x2048xf32>
    %cst_6 = arith.constant 0.000000e+00 : f32
    %7 = vector.broadcast %cst_6 : f32 to vector<32x2048xf32>
    %8 = arith.maximumf %6, %7 : vector<32x2048xf32>
    %c0_7 = arith.constant 0 : index
    %c0_8 = arith.constant 0 : index
    %9 = vector.load %arg3[%c0_7, %c0_8] : memref<2048x8xf32, #tpu.memory_space<vmem>>, vector<2048x8xf32>
    %cst_9 = arith.constant dense<0.000000e+00> : vector<32x8xf32>
    %10 = tpu.matmul %8, %9, %cst_9 {dimension_numbers = #tpu.dot_dimension_numbers<[1], [0], [0], [1], [0, 0, 1, 1], [], []>} : vector<32x2048xf32>, vector<2048x8xf32>, vector<32x8xf32> -> vector<32x8xf32>
    %c0_10 = arith.constant 0 : index
    %c0_11 = arith.constant 0 : index
    %11 = vector.load %arg6[%c0_10, %c0_11] : memref<6x32xf32, #tpu.memory_space<vmem>>, vector<6x32xf32>
    %cst_12 = arith.constant dense<0.000000e+00> : vector<6x8xf32>
    %12 = tpu.matmul %11, %10, %cst_12 {dimension_numbers = #tpu.dot_dimension_numbers<[1], [0], [0], [1], [0, 0, 1, 1], [], []>} : vector<6x32xf32>, vector<32x8xf32>, vector<6x8xf32> -> vector<6x8xf32>
    %c0_13 = arith.constant 0 : index
    %c0_14 = arith.constant 0 : index
    %13 = vector.load %arg7[%c0_13, %c0_14] : memref<6x1xf32, #tpu.memory_space<vmem>>, vector<6x1xf32>
    %14 = vector.broadcast %13 : vector<6x1xf32> to vector<6x8xf32>
    %15 = arith.addf %12, %14 : vector<6x8xf32>
    %16 = vector.extract_strided_slice %15 {offsets = [0, 0], sizes = [5, 8], strides = [1, 1]} : vector<6x8xf32> to vector<5x8xf32>
    %17 = vector.extract_strided_slice %15 {offsets = [5, 0], sizes = [1, 8], strides = [1, 1]} : vector<6x8xf32> to vector<1x8xf32>
    %cst_15 = arith.constant dense<0xFF800000> : vector<8xf32>
    %18 = vector.multi_reduction <maximumf>, %16, %cst_15 [0] : vector<5x8xf32> to vector<8xf32>
    %19 = vector.shape_cast %18 : vector<8xf32> to vector<1x8xf32>
    %20 = vector.broadcast %19 : vector<1x8xf32> to vector<5x8xf32>
    %21 = arith.subf %16, %20 : vector<5x8xf32>
    %22 = math.exp %21 : vector<5x8xf32>
    %cst_16 = arith.constant dense<0.000000e+00> : vector<8xf32>
    %23 = vector.multi_reduction <add>, %22, %cst_16 [0] : vector<5x8xf32> to vector<8xf32>
    %24 = vector.shape_cast %23 : vector<8xf32> to vector<1x8xf32>
    %25 = vector.broadcast %24 : vector<1x8xf32> to vector<5x8xf32>
    %26 = arith.divf %22, %25 : vector<5x8xf32>
    %27 = math.log %24 : vector<1x8xf32>
    %28 = vector.broadcast %27 : vector<1x8xf32> to vector<5x8xf32>
    %29 = arith.subf %21, %28 : vector<5x8xf32>
    %30 = arith.mulf %29, %26 : vector<5x8xf32>
    %cst_17 = arith.constant dense<0.000000e+00> : vector<8xf32>
    %31 = vector.multi_reduction <add>, %30, %cst_17 [0] : vector<5x8xf32> to vector<8xf32>
    %32 = vector.shape_cast %31 : vector<8xf32> to vector<1x8xf32>
    %cst_18 = arith.constant 0.000000e+00 : f32
    %33 = vector.broadcast %cst_18 : f32 to vector<1x8xf32>
    %34 = arith.subf %33, %32 : vector<1x8xf32>
    %c0_19 = arith.constant 0 : index
    %c0_20 = arith.constant 0 : index
    %c0_21 = arith.constant 0 : index
    %35 = vector.load %arg8[%c0_19, %c0_20, %c0_21] : memref<1x5x8xf32, #tpu.memory_space<vmem>>, vector<1x5x8xf32>
    %36 = vector.shape_cast %35 : vector<1x5x8xf32> to vector<5x8xf32>
    %37 = arith.addf %29, %36 : vector<5x8xf32>
    %cst_22 = arith.constant dense<0xFF800000> : vector<8xf32>
    %38 = vector.multi_reduction <maximumf>, %37, %cst_22 [0] : vector<5x8xf32> to vector<8xf32>
    %39 = vector.shape_cast %38 : vector<8xf32> to vector<1x8xf32>
    %40 = tpu.iota {dimensions = array<i32: 0>} : vector<5x8xi32>
    %41 = arith.sitofp %40 : vector<5x8xi32> to vector<5x8xf32>
    %42 = vector.broadcast %39 : vector<1x8xf32> to vector<5x8xf32>
    %43 = arith.cmpf oge, %37, %42 : vector<5x8xf32>
    %cst_23 = arith.constant 5.000000e+00 : f32
    %44 = vector.broadcast %cst_23 : f32 to vector<5x8xf32>
    %45 = arith.select %43, %41, %44 : vector<5x8xi1>, vector<5x8xf32>
    %cst_24 = arith.constant dense<0x7F800000> : vector<8xf32>
    %46 = vector.multi_reduction <minimumf>, %45, %cst_24 [0] : vector<5x8xf32> to vector<8xf32>
    %47 = vector.shape_cast %46 : vector<8xf32> to vector<1x8xf32>
    %48 = vector.broadcast %47 : vector<1x8xf32> to vector<5x8xf32>
    %49 = arith.cmpf oeq, %41, %48 : vector<5x8xf32>
    %50 = arith.extui %49 : vector<5x8xi1> to vector<5x8xi32>
    %51 = arith.sitofp %50 : vector<5x8xi32> to vector<5x8xf32>
    %52 = arith.mulf %51, %29 : vector<5x8xf32>
    %cst_25 = arith.constant dense<0.000000e+00> : vector<8xf32>
    %53 = vector.multi_reduction <add>, %52, %cst_25 [0] : vector<5x8xf32> to vector<8xf32>
    %54 = vector.shape_cast %53 : vector<8xf32> to vector<1x8xf32>
    %cst_26 = arith.constant 0.000000e+00 : f32
    %55 = vector.broadcast %cst_26 : f32 to vector<1x8xf32>
    %56 = arith.minimumf %17, %55 : vector<1x8xf32>
    %57 = math.absf %17 : vector<1x8xf32>
    %cst_27 = arith.constant 0.000000e+00 : f32
    %58 = vector.broadcast %cst_27 : f32 to vector<1x8xf32>
    %59 = arith.subf %58, %57 : vector<1x8xf32>
    %60 = math.exp %59 : vector<1x8xf32>
    %cst_28 = arith.constant 1.000000e+00 : f32
    %61 = vector.broadcast %cst_28 : f32 to vector<1x8xf32>
    %62 = arith.addf %61, %60 : vector<1x8xf32>
    %63 = math.log %62 : vector<1x8xf32>
    %64 = arith.subf %56, %63 : vector<1x8xf32>
    %65 = math.exp %64 : vector<1x8xf32>
    %66 = arith.mulf %64, %65 : vector<1x8xf32>
    %cst_29 = arith.constant 0.000000e+00 : f32
    %67 = vector.broadcast %cst_29 : f32 to vector<1x8xf32>
    %68 = arith.subf %67, %66 : vector<1x8xf32>
    %69 = arith.addf %54, %64 : vector<1x8xf32>
    %70 = arith.addf %34, %68 : vector<1x8xf32>
    %71 = tpu.concatenate %69, %70, %47, %65 in 0 : vector<1x8xf32>, vector<1x8xf32>, vector<1x8xf32>, vector<1x8xf32> -> vector<4x8xf32>
    %c0_30 = arith.constant 0 : index
    %c0_31 = arith.constant 0 : index
    %c0_32 = arith.constant 0 : index
    %72 = vector.load %arg9[%c0_30, %c0_31, %c0_32] : memref<1x4x8xf32, #tpu.memory_space<vmem>>, vector<1x4x8xf32>
    %73 = vector.shape_cast %72 : vector<1x4x8xf32> to vector<4x8xf32>
    %74 = vector.shape_cast %71 : vector<4x8xf32> to vector<1x4x8xf32>
    tpu.vector_store %arg9[%c0_30, %c0_31, %c0_32], %74 {strides = array<i32>} : memref<1x4x8xf32, #tpu.memory_space<vmem>>, vector<1x4x8xf32>,
    %c0_33 = arith.constant 0 : index
    %c0_34 = arith.constant 0 : index
    %c0_35 = arith.constant 0 : index
    %75 = vector.load %arg2[%c0_33, %c0_34, %c0_35] : memref<1x8x768xf32, #tpu.memory_space<vmem>>, vector<1x8x768xf32>
    %cst_36 = arith.constant 1.000000e+00 : f32
    %76 = vector.broadcast %cst_36 : f32 to vector<1x8x768xf32>
    %77 = arith.addf %75, %76 : vector<1x8x768xf32>
    %cst_37 = arith.constant 1.275000e+02 : f32
    %78 = vector.broadcast %cst_37 : f32 to vector<1x8x768xf32>
    %79 = arith.mulf %77, %78 : vector<1x8x768xf32>
    %cst_38 = arith.constant 0.000000e+00 : f32
    %cst_39 = arith.constant 2.550000e+02 : f32
    %80 = vector.broadcast %cst_38 : f32 to vector<1x8x768xf32>
    %81 = arith.maximumf %80, %79 : vector<1x8x768xf32>
    %82 = vector.broadcast %cst_39 : f32 to vector<1x8x768xf32>
    %83 = arith.minimumf %82, %81 : vector<1x8x768xf32>
    %84 = math.floor %83 : vector<1x8x768xf32>
    %cst_40 = arith.constant 0.00784313772 : f32
    %85 = vector.broadcast %cst_40 : f32 to vector<1x8x768xf32>
    %86 = arith.mulf %84, %85 : vector<1x8x768xf32>
    %cst_41 = arith.constant 1.000000e+00 : f32
    %87 = vector.broadcast %cst_41 : f32 to vector<1x8x768xf32>
    %88 = arith.subf %86, %87 : vector<1x8x768xf32>
    %c0_42 = arith.constant 0 : index
    %c0_43 = arith.constant 0 : index
    %c0_44 = arith.constant 0 : index
    %89 = vector.load %arg10[%c0_42, %c0_43, %c0_44] : memref<1x8x768xf32, #tpu.memory_space<vmem>>, vector<1x8x768xf32>
    tpu.vector_store %arg10[%c0_42, %c0_43, %c0_44], %88 {strides = array<i32>} : memref<1x8x768xf32, #tpu.memory_space<vmem>>, vector<1x8x768xf32>,
    return
  }
  func.func @transform_0(%arg0: i32) -> (i32, i32, i32) {
    %c0_i32 = arith.constant 0 : i32
    %c0_i32_0 = arith.constant 0 : i32
    %c0_i32_1 = arith.constant 0 : i32
    return %arg0, %c0_i32, %c0_i32_0 : i32, i32, i32
  }
  func.func @transform_1(%arg0: i32) -> (i32, i32, i32) {
    %c0_i32 = arith.constant 0 : i32
    %c0_i32_0 = arith.constant 0 : i32
    %c0_i32_1 = arith.constant 0 : i32
    return %arg0, %c0_i32, %c0_i32_0 : i32, i32, i32
  }
  func.func @transform_2(%arg0: i32) -> (i32, i32) {
    %c0_i32 = arith.constant 0 : i32
    %c0_i32_0 = arith.constant 0 : i32
    %c0_i32_1 = arith.constant 0 : i32
    return %c0_i32, %c0_i32_0 : i32, i32
  }
  func.func @transform_3(%arg0: i32) -> (i32, i32) {
    %c0_i32 = arith.constant 0 : i32
    %c0_i32_0 = arith.constant 0 : i32
    %c0_i32_1 = arith.constant 0 : i32
    return %c0_i32, %c0_i32_0 : i32, i32
  }
  func.func @transform_4(%arg0: i32) -> (i32, i32) {
    %c0_i32 = arith.constant 0 : i32
    %c0_i32_0 = arith.constant 0 : i32
    %c0_i32_1 = arith.constant 0 : i32
    return %c0_i32, %c0_i32_0 : i32, i32
  }
  func.func @transform_5(%arg0: i32) -> (i32, i32) {
    %c0_i32 = arith.constant 0 : i32
    %c0_i32_0 = arith.constant 0 : i32
    %c0_i32_1 = arith.constant 0 : i32
    return %c0_i32, %c0_i32_0 : i32, i32
  }
  func.func @transform_6(%arg0: i32) -> (i32, i32) {
    %c0_i32 = arith.constant 0 : i32
    %c0_i32_0 = arith.constant 0 : i32
    %c0_i32_1 = arith.constant 0 : i32
    return %c0_i32, %c0_i32_0 : i32, i32
  }
  func.func @transform_7(%arg0: i32) -> (i32, i32, i32) {
    %c0_i32 = arith.constant 0 : i32
    %c0_i32_0 = arith.constant 0 : i32
    %c0_i32_1 = arith.constant 0 : i32
    return %arg0, %c0_i32, %c0_i32_0 : i32, i32, i32
  }
  func.func @transform_8(%arg0: i32) -> (i32, i32, i32) {
    %c0_i32 = arith.constant 0 : i32
    %c0_i32_0 = arith.constant 0 : i32
    %c0_i32_1 = arith.constant 0 : i32
    return %arg0, %c0_i32, %c0_i32_0 : i32, i32, i32
  }
  func.func @transform_9(%arg0: i32) -> (i32, i32, i32) {
    %c0_i32 = arith.constant 0 : i32
    %c0_i32_0 = arith.constant 0 : i32
    %c0_i32_1 = arith.constant 0 : i32
    return %arg0, %c0_i32, %c0_i32_0 : i32, i32, i32
  }
}

</mosaic_0001>

<bundles_post_ra>
// kernel: tpu_custom_call.1
= control target key start
LH: loop header
LB: loop body
LE: loop exit
PB: predicated region body
PF: predicated region fallthrough
CT: control target
= control target key end

     0   :  { %15 = vsyncpa [#allocation3], 0  ;;  %vm138_vm0 = vcmask 1042432   ;;  %v2992_v7 = vmov 0.0   ;;  %v2993_v13 = vmov 0   ;;  %vm2994_vm1 = vmmov 1   ;;  %s4464_s0 = inlined_call_operand.vmem [shape: f32[1,27,2048], index: 0, kind: input, shape index: {}]   ;;  %s4465_s1 = inlined_call_operand.vmem [shape: f32[1,8,768], index: 1, kind: input, shape index: {}]   ;;  %s4466_s2 = inlined_call_operand.vmem [shape: f32[2048,8], index: 2, kind: input, shape index: {}]   ;;  %s4467_s3 = inlined_call_operand.vmem [shape: f32[32,27], index: 3, kind: input, shape index: {}]   ;;  %s4468_s4 = inlined_call_operand.vmem [shape: f32[32,1], index: 4, kind: input, shape index: {}]   ;;  %s4469_s5 = inlined_call_operand.vmem [shape: f32[6,32], index: 5, kind: input, shape index: {}]   ;;  %s4470_s6 = inlined_call_operand.vmem [shape: f32[6,1], index: 6, kind: input, shape index: {}]   ;;  %s4471_s7 = inlined_call_operand.vmem [shape: f32[1,5,8], index: 7, kind: input, shape index: {}]   ;;  %s4472_s8 = inlined_call_operand.hbm [shape: f32[1,4,8], index: 8, kind: output, shape index: {0}]   ;;  %s4473_s9 = inlined_call_operand.hbm [shape: f32[1,8,768], index: 9, kind: output, shape index: {1}]  }
   0x1   :  { %v38_v0 = vld [vmem:[%s4464_s0 + $0x8] sm:$0xff]  ;;  %v40_v2 = vld [vmem:[%s4464_s0 + $0x18] sm:$0xff]  ;;  %v37_v5 = vld [vmem:[%s4464_s0] sm:$0xff]  ;;  %251 = vmatprep.mubr.f32.mxu0 %v2992_v7  ;;  %340 = vmatprep.mubr.f32.mxu1 %v2992_v7  ;;  %vm125_vm3 = vcmask 220160  }
   0x2   :  { %v54_v1 = vld [vmem:[%s4464_s0 + $0x88] sm:$0xff]  ;;  %v56_v4 = vld [vmem:[%s4464_s0 + $0x98] sm:$0xff]  ;;  %v53_v6 = vld [vmem:[%s4464_s0 + $0x80] sm:$0xff]  ;;  %2930 = vset.pattern.permute.xlu0 %v2993_v13  ;;  %2931 = vset.pattern.permute.xlu1 %v2993_v13 }
   0x3   :  { %v2581_v3 = vpack.c.bf16 %v54_v1, %v38_v0  ;;  %v2591_v8 = vpack.c.bf16 %v56_v4, %v40_v2  ;;  %v2583_v9 = vpack.c.bf16 %v53_v6, %v37_v5  ;;  %v39_v10 = vld [vmem:[%s4464_s0 + $0x10] sm:$0xff]  ;;  %v70_v12 = vld [vmem:[%s4464_s0 + $0x108] sm:$0xff]  ;;  %vm3082_vm2 = vmpackc.low %vm138_vm0, %vm2994_vm1 }
   0x4   :  { %v55_v11 = vld [vmem:[%s4464_s0 + $0x90] sm:$0xff]  ;;  %v86_v15 = vld [vmem:[%s4464_s0 + $0x188] sm:$0x7]  ;;  %v72_v17 = vld [vmem:[%s4464_s0 + $0x118] sm:$0xff] }
   0x5   :  { %2582 = vmatprep.subr.bf16.mxu0 %v2581_v3  ;;  %v2593_v14 = vpack.c.bf16 %v55_v11, %v39_v10  ;;  %2592 = vmatprep.subr.bf16.mxu1 %v2591_v8  ;;  %v2585_v18 = vpack.c.bf16 %v86_v15, %v70_v12  ;;  %v88_v19 = vld [vmem:[%s4464_s0 + $0x198] sm:$0x7]  ;;  %v69_v20 = vld [vmem:[%s4464_s0 + $0x100] sm:$0xff]  ;;  %v71_v24 = vld [vmem:[%s4464_s0 + $0x110] sm:$0xff] }
   0x6   :  { %2584 = vmatpush1.bf16.msra.mxu0 %v2583_v9  ;;  %v85_v21 = vld [vmem:[%s4464_s0 + $0x180] sm:$0x7]  ;;  %v2595_v22 = vpack.c.bf16 %v88_v19, %v72_v17  ;;  %v87_v25 = vld [vmem:[%s4464_s0 + $0x190] sm:$0x7]  ;;  %v42_v28 = vld [vmem:[%s4464_s0 + $0x28] sm:$0xff] }
   0x7   :  { %2594 = vmatpush1.bf16.msra.mxu1 %v2593_v14  ;;  %v2588_v23 = vpack.c.bf16 %v85_v21, %v69_v20  ;;  %2587 = vmatprep.subr.msk.bf16.mxu0 %vm3082_vm2, %v2585_v18  ;;  %v2598_v26 = vpack.c.bf16 %v87_v25, %v71_v24  ;;  %v3109_v27 = vld [vmem:[%s4467_s3] sm:$0xff]  ;;  %v58_v29 = vld [vmem:[%s4464_s0 + $0xa8] sm:$0xff]  ;;  %v44_v30 = vld [vmem:[%s4464_s0 + $0x38] sm:$0xff] }
   0x8   :  { %2597 = vmatprep.subr.msk.bf16.mxu1 %vm3082_vm2, %v2595_v22  ;;  %v60_v31 = vld [vmem:[%s4464_s0 + $0xb8] sm:$0xff]  ;;  %v2601_v32 = vpack.c.bf16 %v58_v29, %v42_v28  ;;  %v41_v34 = vld [vmem:[%s4464_s0 + $0x20] sm:$0xff]  ;;  %v43_v36 = vld [vmem:[%s4464_s0 + $0x30] sm:$0xff] }
   0x9   :  { %v2611_v33 = vpack.c.bf16 %v60_v31, %v44_v30  ;;  %v57_v35 = vld [vmem:[%s4464_s0 + $0xa0] sm:$0xff]  ;;  %v59_v38 = vld [vmem:[%s4464_s0 + $0xb0] sm:$0xff]  ;;  %v74_v39 = vld [vmem:[%s4464_s0 + $0x128] sm:$0xff] }
   0xa   :  { %2590 = vmatpush1.bf16.msk.msra.mxu0 %vm3082_vm2, %v2588_v23  ;;  %v2603_v37 = vpack.c.bf16 %v57_v35, %v41_v34  ;;  %v3147_v40 = vld [vmem:[%s4467_s3 + $0x8] sm:$0xff]  ;;  %v2613_v41 = vpack.c.bf16 %v59_v38, %v43_v36  ;;  %v76_v43 = vld [vmem:[%s4464_s0 + $0x138] sm:$0xff]  ;;  %v73_v47 = vld [vmem:[%s4464_s0 + $0x120] sm:$0xff] }
   0xb   :  { %2600 = vmatpush1.bf16.msk.msra.mxu1 %vm3082_vm2, %v2598_v26  ;;  %2602 = vmatprep.subr.bf16.mxu0 %v2601_v32  ;;  %v90_v42 = vld [vmem:[%s4464_s0 + $0x1a8] sm:$0x7]  ;;  %v92_v44 = vld [vmem:[%s4464_s0 + $0x1b8] sm:$0x7]  ;;  %v89_v48 = vld [vmem:[%s4464_s0 + $0x1a0] sm:$0x7] }
   0xc   :  { %2612 = vmatprep.subr.bf16.mxu1 %v2611_v33  ;;  %v2605_v45 = vpack.c.bf16 %v90_v42, %v74_v39  ;;  %v2615_v46 = vpack.c.bf16 %v92_v44, %v76_v43  ;;  %v75_v49 = vld [vmem:[%s4464_s0 + $0x130] sm:$0xff]  ;;  %v46_v51 = vld [vmem:[%s4464_s0 + $0x48] sm:$0xff]  ;;  %v2608_v53 = vpack.c.bf16 %v89_v48, %v73_v47  ;;  %v48_v54 = vld [vmem:[%s4464_s0 + $0x58] sm:$0xff] }
   0xd   :  { %2159 = vmatmul.mubr.msk.f32.vlgmr.msra.gmra.mrb[0].mxu0 %vm125_vm3, %v3109_v27  ;;  %v91_v50 = vld [vmem:[%s4464_s0 + $0x1b0] sm:$0x7]  ;;  %v62_v52 = vld [vmem:[%s4464_s0 + $0xc8] sm:$0xff]  ;;  %v64_v55 = vld [vmem:[%s4464_s0 + $0xd8] sm:$0xff] }
   0xe   :  { %2165 = vmatmul.mubr.msk.f32.vlgmr.msra.gmra.mrb[0].mxu1 %vm125_vm3, %v3109_v27  ;;  %257 = vmatprep.mubr.f32.mxu0 %v2992_v7  ;;  %v2618_v56 = vpack.c.bf16 %v91_v50, %v75_v49  ;;  %v2621_v57 = vpack.c.bf16 %v62_v52, %v46_v51  ;;  %v2631_v58 = vpack.c.bf16 %v64_v55, %v48_v54  ;;  %v3200_v59 = vld [vmem:[%s4467_s3 + $0x10] sm:$0xff]  ;;  %v3215_v60 = vld [vmem:[%s4467_s3 + $0x18] sm:$0xff]  ;;  %v45_v61 = vld [vmem:[%s4464_s0 + $0x40] sm:$0xff] }
   0xf   :  { %346 = vmatprep.mubr.f32.mxu1 %v2992_v7  ;;  %2604 = vmatpush1.bf16.msra.mxu0 %v2603_v37  ;;  %v61_v62 = vld [vmem:[%s4464_s0 + $0xc0] sm:$0xff]  ;;  %v47_v63 = vld [vmem:[%s4464_s0 + $0x50] sm:$0xff]  ;;  %v78_v1 = vld [vmem:[%s4464_s0 + $0x148] sm:$0xff] }
  0x10   :  { %2614 = vmatpush1.bf16.msra.mxu1 %v2613_v41  ;;  %2607 = vmatprep.subr.msk.bf16.mxu0 %vm3082_vm2, %v2605_v45  ;;  %v63_v0 = vld [vmem:[%s4464_s0 + $0xd0] sm:$0xff]  ;;  %v94_v2 = vld [vmem:[%s4464_s0 + $0x1c8] sm:$0x7]  ;;  %v101_v3 = vld [vmem:[%s4468_s4] sm:$0xff]  ;;  %v2623_v8 = vpack.c.bf16 %v61_v62, %v45_v61 }
  0x11   :  { %2160 = vmatmul.mubr.msk.f32.gmra.mrb[2].mxu0 %vm125_vm3, %v3147_v40  ;;  %2617 = vmatprep.subr.msk.bf16.mxu1 %vm3082_vm2, %v2615_v46  ;;  %v80_v4 = vld [vmem:[%s4464_s0 + $0x158] sm:$0xff]  ;;  %v103_v6 = vld [vmem:[%s4468_s4 + $0x10] sm:$0xff]  ;;  %v2633_v9 = vpack.c.bf16 %v63_v0, %v47_v63  ;;  %v2625_v10 = vpack.c.bf16 %v94_v2, %v78_v1  ;;  %v77_v11 = vld [vmem:[%s4464_s0 + $0x140] sm:$0xff] }
  0x12   :  { %2166 = vmatmul.mubr.msk.f32.gmra.mrb[2].mxu1 %vm125_vm3, %v3147_v40  ;;  %263 = vmatprep.mubr.f32.mxu0 %v2992_v7  ;;  %v96_v5 = vld [vmem:[%s4464_s0 + $0x1d8] sm:$0x7]  ;;  %v93_v12 = vld [vmem:[%s4464_s0 + $0x1c0] sm:$0x7]  ;;  %v79_v13 = vld [vmem:[%s4464_s0 + $0x150] sm:$0xff] }
  0x13   :  { %352 = vmatprep.mubr.f32.mxu1 %v2992_v7  ;;  %2610 = vmatpush1.bf16.msk.msra.mxu0 %vm3082_vm2, %v2608_v53  ;;  %v2635_v14 = vpack.c.bf16 %v96_v5, %v80_v4  ;;  %v95_v15 = vld [vmem:[%s4464_s0 + $0x1d0] sm:$0x7]  ;;  %v50_v17 = vld [vmem:[%s4464_s0 + $0x68] sm:$0xff]  ;;  %v52_v19 = vld [vmem:[%s4464_s0 + $0x78] sm:$0xff]  ;;  %v2628_v21 = vpack.c.bf16 %v93_v12, %v77_v11 }
  0x14   :  { %2620 = vmatpush1.bf16.msk.msra.mxu1 %vm3082_vm2, %v2618_v56  ;;  %2622 = vmatprep.subr.bf16.mxu0 %v2621_v57  ;;  %v66_v18 = vld [vmem:[%s4464_s0 + $0xe8] sm:$0xff]  ;;  %v68_v20 = vld [vmem:[%s4464_s0 + $0xf8] sm:$0xff]  ;;  %v2638_v22 = vpack.c.bf16 %v95_v15, %v79_v13  ;;  %v49_v28 = vld [vmem:[%s4464_s0 + $0x60] sm:$0xff] }
  0x15   :  { %2161 = vmatmul.mubr.msk.f32.gmra.mrb[4].mxu0 %vm125_vm3, %v3200_v59  ;;  %2632 = vmatprep.subr.bf16.mxu1 %v2631_v58  ;;  %v2641_v23 = vpack.c.bf16 %v66_v18, %v50_v17  ;;  %v2651_v24 = vpack.c.bf16 %v68_v20, %v52_v19  ;;  %v102_v25 = vld [vmem:[%s4468_s4 + $0x8] sm:$0xff]  ;;  %v104_v26 = vld [vmem:[%s4468_s4 + $0x18] sm:$0xff]  ;;  %v65_v29 = vld [vmem:[%s4464_s0 + $0xe0] sm:$0xff] }
  0x16   :  { %2167 = vmatmul.mubr.msk.f32.gmra.mrb[4].mxu1 %vm125_vm3, %v3200_v59  ;;  %269 = vmatprep.mubr.f32.mxu0 %v2992_v7  ;;  %v51_v30 = vld [vmem:[%s4464_s0 + $0x70] sm:$0xff]  ;;  %v1900_v31 = vld [vmem:[%s4470_s6] sm:$0x3f]  ;;  %v82_v33 = vld [vmem:[%s4464_s0 + $0x168] sm:$0xff]  ;;  %v2643_v37 = vpack.c.bf16 %v65_v29, %v49_v28 }
  0x17   :  { %358 = vmatprep.mubr.f32.mxu1 %v2992_v7  ;;  %107 = vperm.xlu0 %2930, %v101_v3   ;;  %v67_v32 = vld [vmem:[%s4464_s0 + $0xf0] sm:$0xff]  ;;  %v98_v34 = vld [vmem:[%s4464_s0 + $0x1e8] sm:$0x7]  ;;  %v84_v35 = vld [vmem:[%s4464_s0 + $0x178] sm:$0xff] }
  0x18   :  { %117 = vperm.xlu1 %2931, %v103_v6   ;;  %v100_v36 = vld [vmem:[%s4464_s0 + $0x1f8] sm:$0x7]  ;;  %v81_v38 = vld [vmem:[%s4464_s0 + $0x160] sm:$0xff]  ;;  %v2653_v39 = vpack.c.bf16 %v67_v32, %v51_v30  ;;  %v2645_v41 = vpack.c.bf16 %v98_v34, %v82_v33  ;;  %v83_v43 = vld [vmem:[%s4464_s0 + $0x170] sm:$0xff] }
  0x19   :  { %2162 = vmatmul.mubr.msk.f32.gmra.mrb[6].mxu0 %vm125_vm3, %v3215_v60  ;;  %v97_v42 = vld [vmem:[%s4464_s0 + $0x1e0] sm:$0x7]  ;;  %v99_v44 = vld [vmem:[%s4464_s0 + $0x1f0] sm:$0x7]  ;;  %v2655_v45 = vpack.c.bf16 %v100_v36, %v84_v35  ;;  %v980_v47 = vld [vmem:[%s4466_s2 + $0x88] sm:$0xff] }
  0x1a   :  { %2168 = vmatmul.mubr.msk.f32.gmra.mrb[6].mxu1 %vm125_vm3, %v3215_v60  ;;  %429 = vmatprep.mubr.f32.mxu0 %v2992_v7  ;;  %v979_v46 = vld [vmem:[%s4466_s2 + $0x80] sm:$0xff] }
  0x1b   :  { %518 = vmatprep.mubr.f32.mxu1 %v2992_v7  ;;  %112 = vperm.xlu0 %2930, %v102_v25  }
  0x1c   :  { %122 = vperm.xlu1 %2931, %v104_v26  }
  0x1d   :  { %2171 = vmatmul.mubr.msk.f32.vlgmr.msra.gmra.mrb[8].mxu0 %vm125_vm3, %v3109_v27 }
  0x1e   :  { %2177 = vmatmul.mubr.msk.f32.vlgmr.msra.gmra.mrb[8].mxu1 %vm125_vm3, %v3109_v27  ;;  %435 = vmatprep.mubr.f32.mxu0 %v2992_v7 }
  0x1f   :  { %524 = vmatprep.mubr.f32.mxu1 %v2992_v7  ;;  %2624 = vmatpush1.bf16.msra.mxu0 %v2623_v8 }
  0x20   :  { %2634 = vmatpush1.bf16.msra.mxu1 %v2633_v9  ;;  %2627 = vmatprep.subr.msk.bf16.mxu0 %vm3082_vm2, %v2625_v10 }
  0x21   :  { %2172 = vmatmul.mubr.msk.f32.gmra.mrb[10].mxu0 %vm125_vm3, %v3147_v40  ;;  %2637 = vmatprep.subr.msk.bf16.mxu1 %vm3082_vm2, %v2635_v14 }
  0x22   :  { %2178 = vmatmul.mubr.msk.f32.gmra.mrb[10].mxu1 %vm125_vm3, %v3147_v40  ;;  %441 = vmatprep.mubr.f32.mxu0 %v2992_v7 }
  0x23   :  { %530 = vmatprep.mubr.f32.mxu1 %v2992_v7  ;;  %2630 = vmatpush1.bf16.msk.msra.mxu0 %vm3082_vm2, %v2628_v21 }
  0x24   :  { %2640 = vmatpush1.bf16.msk.msra.mxu1 %vm3082_vm2, %v2638_v22  ;;  %2642 = vmatprep.subr.bf16.mxu0 %v2641_v23 }
  0x25   :  { %2173 = vmatmul.mubr.msk.f32.gmra.mrb[12].mxu0 %vm125_vm3, %v3200_v59  ;;  %2652 = vmatprep.subr.bf16.mxu1 %v2651_v24 }
  0x26   :  { %2179 = vmatmul.mubr.msk.f32.gmra.mrb[12].mxu1 %vm125_vm3, %v3200_v59  ;;  %447 = vmatprep.mubr.f32.mxu0 %v2992_v7 }
  0x27   :  { %536 = vmatprep.mubr.f32.mxu1 %v2992_v7  ;;  %1903 = vperm.xlu0 %2930, %v1900_v31  }
  0x29   :  { %2174 = vmatmul.mubr.msk.f32.gmra.mrb[14].mxu0 %vm125_vm3, %v3215_v60 }
  0x2a   :  { %2180 = vmatmul.mubr.msk.f32.gmra.mrb[14].mxu1 %vm125_vm3, %v3215_v60  ;;  %607 = vmatprep.mubr.f32.mxu0 %v2992_v7 }
  0x2b   :  { %696 = vmatprep.mubr.f32.mxu1 %v2992_v7 }
  0x2d   :  { %2183 = vmatmul.mubr.msk.f32.vlgmr.msra.gmra.mrb[16].mxu0 %vm125_vm3, %v3109_v27 }
  0x2e   :  { %16 = vsyncpa [#allocation5], 0  ;;  %2189 = vmatmul.mubr.msk.f32.vlgmr.msra.gmra.mrb[16].mxu1 %vm125_vm3, %v3109_v27  ;;  %613 = vmatprep.mubr.f32.mxu0 %v2992_v7  ;;  %v1011_v48 = vld [vmem:[%s4466_s2 + $0x180] sm:$0xff]  ;;  %v1012_v49 = vld [vmem:[%s4466_s2 + $0x188] sm:$0xff]  ;;  %v2648_v50 = vpack.c.bf16 %v97_v42, %v81_v38  ;;  %v2658_v51 = vpack.c.bf16 %v99_v44, %v83_v43  ;;  %v2661_v52 = vpack.c.bf16 %v980_v47, %v979_v46  ;;  %vm2996_vm4 = vmmov 0  }
  0x2f   :  { %702 = vmatprep.mubr.f32.mxu1 %v2992_v7  ;;  %2644 = vmatpush1.bf16.msra.mxu0 %v2643_v37  ;;  %v2693_v53 = vpack.c.bf16 %v1012_v49, %v1011_v48  ;;  %v963_v54 = vld [vmem:[%s4466_s2] sm:$0xff]  ;;  %v964_v16 = vld [vmem:[%s4466_s2 + $0x8] sm:$0xff]  ;;  %v981_v57 = vld [vmem:[%s4466_s2 + $0x90] sm:$0xff]  ;;  %vm1906_vm5 = vcmask 261120  }
  0x30   :  { %2654 = vmatpush1.bf16.msra.mxu1 %v2653_v39  ;;  %2647 = vmatprep.subr.msk.bf16.mxu0 %vm3082_vm2, %v2645_v41  ;;  %v995_v55 = vld [vmem:[%s4466_s2 + $0x100] sm:$0xff]  ;;  %v996_v56 = vld [vmem:[%s4466_s2 + $0x108] sm:$0xff]  ;;  %v982_v58 = vld [vmem:[%s4466_s2 + $0x98] sm:$0xff]  ;;  %v2663_v63 = vpack.c.bf16 %v964_v16, %v963_v54 }
  0x31   :  { %2184 = vmatmul.mubr.msk.f32.gmra.mrb[18].mxu0 %vm125_vm3, %v3147_v40  ;;  %2657 = vmatprep.subr.msk.bf16.mxu1 %vm3082_vm2, %v2655_v45  ;;  %v1013_v61 = vld [vmem:[%s4466_s2 + $0x190] sm:$0xff]  ;;  %v1014_v62 = vld [vmem:[%s4466_s2 + $0x198] sm:$0xff]  ;;  %v2695_v0 = vpack.c.bf16 %v996_v56, %v995_v55  ;;  %v2665_v1 = vpack.c.bf16 %v982_v58, %v981_v57  ;;  %v983_v8 = vld [vmem:[%s4466_s2 + $0xa0] sm:$0xff] }
  0x32   :  { %2190 = vmatmul.mubr.msk.f32.gmra.mrb[18].mxu1 %vm125_vm3, %v3147_v40  ;;  %619 = vmatprep.mubr.f32.mxu0 %v2992_v7  ;;  %v965_v2 = vld [vmem:[%s4466_s2 + $0x10] sm:$0xff]  ;;  %v966_v3 = vld [vmem:[%s4466_s2 + $0x18] sm:$0xff]  ;;  %v2697_v5 = vpack.c.bf16 %v1014_v62, %v1013_v61  ;;  %v984_v9 = vld [vmem:[%s4466_s2 + $0xa8] sm:$0xff] }
  0x33   :  { %708 = vmatprep.mubr.f32.mxu1 %v2992_v7  ;;  %2650 = vmatpush1.bf16.msk.msra.mxu0 %vm3082_vm2, %v2648_v50  ;;  %v997_v4 = vld [vmem:[%s4466_s2 + $0x110] sm:$0xff]  ;;  %v998_v6 = vld [vmem:[%s4466_s2 + $0x118] sm:$0xff]  ;;  %v1015_v10 = vld [vmem:[%s4466_s2 + $0x1a0] sm:$0xff]  ;;  %v2667_v12 = vpack.c.bf16 %v966_v3, %v965_v2  ;;  %v2669_v14 = vpack.c.bf16 %v984_v9, %v983_v8 }
  0x34   :  { %2660 = vmatpush1.bf16.msk.msra.mxu1 %vm3082_vm2, %v2658_v51  ;;  %2662 = vmatprep.subr.bf16.mxu0 %v2661_v52  ;;  %v1016_v11 = vld [vmem:[%s4466_s2 + $0x1a8] sm:$0xff]  ;;  %v2699_v13 = vpack.c.bf16 %v998_v6, %v997_v4  ;;  %v999_v17 = vld [vmem:[%s4466_s2 + $0x120] sm:$0xff]  ;;  %v985_v20 = vld [vmem:[%s4466_s2 + $0xb0] sm:$0xff] }
  0x35   :  { %2185 = vmatmul.mubr.msk.f32.gmra.mrb[20].mxu0 %vm125_vm3, %v3200_v59  ;;  %2694 = vmatprep.subr.bf16.mxu1 %v2693_v53  ;;  %v968_v15 = vld [vmem:[%s4466_s2 + $0x28] sm:$0xff]  ;;  %v2701_v18 = vpack.c.bf16 %v1016_v11, %v1015_v10  ;;  %v986_v21 = vld [vmem:[%s4466_s2 + $0xb8] sm:$0xff]  ;;  %v1017_v22 = vld [vmem:[%s4466_s2 + $0x1b0] sm:$0xff] }
  0x36   :  { %2191 = vmatmul.mubr.msk.f32.gmra.mrb[20].mxu1 %vm125_vm3, %v3200_v59  ;;  %625 = vmatprep.mubr.f32.mxu0 %v2992_v7  ;;  %v1000_v19 = vld [vmem:[%s4466_s2 + $0x128] sm:$0xff]  ;;  %v1018_v23 = vld [vmem:[%s4466_s2 + $0x1b8] sm:$0xff]  ;;  %v2673_v26 = vpack.c.bf16 %v986_v21, %v985_v20  ;;  %v1001_v29 = vld [vmem:[%s4466_s2 + $0x130] sm:$0xff] }
  0x37   :  { %714 = vmatprep.mubr.f32.mxu1 %v2992_v7  ;;  %v2703_v25 = vpack.c.bf16 %v1000_v19, %v999_v17  ;;  %v970_v28 = vld [vmem:[%s4466_s2 + $0x38] sm:$0xff]  ;;  %v2705_v30 = vpack.c.bf16 %v1018_v23, %v1017_v22  ;;  %v987_v32 = vld [vmem:[%s4466_s2 + $0xc0] sm:$0xff]  ;;  %v988_v33 = vld [vmem:[%s4466_s2 + $0xc8] sm:$0xff] }
  0x38   :  { %v1002_v31 = vld [vmem:[%s4466_s2 + $0x138] sm:$0xff]  ;;  %v1019_v34 = vld [vmem:[%s4466_s2 + $0x1c0] sm:$0xff]  ;;  %v1020_v35 = vld [vmem:[%s4466_s2 + $0x1c8] sm:$0xff]  ;;  %v2677_v38 = vpack.c.bf16 %v988_v33, %v987_v32 }
  0x39   :  { %2186 = vmatmul.mubr.msk.f32.gmra.mrb[22].mxu0 %vm125_vm3, %v3215_v60  ;;  %v2707_v37 = vpack.c.bf16 %v1002_v31, %v1001_v29  ;;  %v972_v39 = vld [vmem:[%s4466_s2 + $0x48] sm:$0xff]  ;;  %v1003_v41 = vld [vmem:[%s4466_s2 + $0x140] sm:$0xff]  ;;  %v2709_v42 = vpack.c.bf16 %v1020_v35, %v1019_v34  ;;  %v989_v44 = vld [vmem:[%s4466_s2 + $0xd0] sm:$0xff] }
  0x3a   :  { %2192 = vmatmul.mubr.msk.f32.gmra.mrb[22].mxu1 %vm125_vm3, %v3215_v60  ;;  %785 = vmatprep.mubr.f32.mxu0 %v2992_v7  ;;  %v1004_v43 = vld [vmem:[%s4466_s2 + $0x148] sm:$0xff]  ;;  %v990_v45 = vld [vmem:[%s4466_s2 + $0xd8] sm:$0xff]  ;;  %v1021_v46 = vld [vmem:[%s4466_s2 + $0x1d0] sm:$0xff] }
  0x3b   :  { %874 = vmatprep.mubr.f32.mxu1 %v2992_v7  ;;  %v1022_v47 = vld [vmem:[%s4466_s2 + $0x1d8] sm:$0xff]  ;;  %v2711_v49 = vpack.c.bf16 %v1004_v43, %v1003_v41  ;;  %v2681_v50 = vpack.c.bf16 %v990_v45, %v989_v44  ;;  %v973_v51 = vld [vmem:[%s4466_s2 + $0x50] sm:$0xff]  ;;  %v991_v16 = vld [vmem:[%s4466_s2 + $0xe0] sm:$0xff] }
  0x3c   :  { %v1005_v52 = vld [vmem:[%s4466_s2 + $0x150] sm:$0xff]  ;;  %v2713_v53 = vpack.c.bf16 %v1022_v47, %v1021_v46  ;;  %v1006_v54 = vld [vmem:[%s4466_s2 + $0x158] sm:$0xff]  ;;  %v992_v55 = vld [vmem:[%s4466_s2 + $0xe8] sm:$0xff] }
  0x3d   :  { %2195 = vmatmul.mubr.msk.f32.vlgmr.msra.gmra.mrb[24].mxu0 %vm125_vm3, %v3109_v27  ;;  %v1023_v56 = vld [vmem:[%s4466_s2 + $0x1e0] sm:$0xff]  ;;  %v1024_v57 = vld [vmem:[%s4466_s2 + $0x1e8] sm:$0xff]  ;;  %v2715_v61 = vpack.c.bf16 %v1006_v54, %v1005_v52  ;;  %v2685_v62 = vpack.c.bf16 %v992_v55, %v991_v16  ;;  %v993_v6 = vld [vmem:[%s4466_s2 + $0xf0] sm:$0xff] }
  0x3e   :  { %2201 = vmatmul.mubr.msk.f32.vlgmr.msra.gmra.mrb[24].mxu1 %vm125_vm3, %v3109_v27  ;;  %791 = vmatprep.mubr.f32.mxu0 %v2992_v7  ;;  %v967_v27 = vld [vmem:[%s4466_s2 + $0x20] sm:$0xff]  ;;  %v1008_v3 = vld [vmem:[%s4466_s2 + $0x168] sm:$0xff]  ;;  %v994_v8 = vld [vmem:[%s4466_s2 + $0xf8] sm:$0xff] }
  0x3f   :  { %880 = vmatprep.mubr.f32.mxu1 %v2992_v7  ;;  %2664 = vmatpush3.bf16.msra.mxu0 %v2663_v63  ;;  %v2671_v24 = vpack.c.bf16 %v968_v15, %v967_v27  ;;  %v975_v63 = vld [vmem:[%s4466_s2 + $0x60] sm:$0xff]  ;;  %v1025_v9 = vld [vmem:[%s4466_s2 + $0x1f0] sm:$0xff]  ;;  %v2689_v10 = vpack.c.bf16 %v994_v8, %v993_v6  ;;  %v1026_v11 = vld [vmem:[%s4466_s2 + $0x1f8] sm:$0xff] }
  0x40   :  { %2696 = vmatpush3.bf16.msra.mxu1 %v2695_v0  ;;  %2666 = vmatprep.subr.bf16.mxu0 %v2665_v1  ;;  %v976_v0 = vld [vmem:[%s4466_s2 + $0x68] sm:$0xff]  ;;  %v2717_v1 = vpack.c.bf16 %v1024_v57, %v1023_v56  ;;  %v1007_v2 = vld [vmem:[%s4466_s2 + $0x160] sm:$0xff]  ;;  %v1009_v15 = vld [vmem:[%s4466_s2 + $0x170] sm:$0xff] }
  0x41   :  { %2196 = vmatmul.mubr.msk.f32.gmra.mrb[26].mxu0 %vm125_vm3, %v3147_v40  ;;  %2698 = vmatprep.subr.bf16.mxu1 %v2697_v5  ;;  %v2687_v4 = vpack.c.bf16 %v976_v0, %v975_v63  ;;  %v2719_v5 = vpack.c.bf16 %v1008_v3, %v1007_v2  ;;  %v1010_v17 = vld [vmem:[%s4466_s2 + $0x178] sm:$0xff]  ;;  %v1043_v19 = vld [vmem:[%s4466_s2 + $0x280] sm:$0xff]  ;;  %v1044_v20 = vld [vmem:[%s4466_s2 + $0x288] sm:$0xff] }
  0x42   :  { %2202 = vmatmul.mubr.msk.f32.gmra.mrb[26].mxu1 %vm125_vm3, %v3147_v40  ;;  %797 = vmatprep.mubr.f32.mxu0 %v2992_v7  ;;  %v969_v40 = vld [vmem:[%s4466_s2 + $0x30] sm:$0xff]  ;;  %v1075_v21 = vld [vmem:[%s4466_s2 + $0x380] sm:$0xff]  ;;  %v2725_v22 = vpack.c.bf16 %v1044_v20, %v1043_v19  ;;  %v1076_v23 = vld [vmem:[%s4466_s2 + $0x388] sm:$0xff] }
  0x43   :  { %886 = vmatprep.mubr.f32.mxu1 %v2992_v7  ;;  %2668 = vmatpush3.bf16.msra.mxu0 %v2667_v12  ;;  %v2675_v36 = vpack.c.bf16 %v970_v28, %v969_v40  ;;  %v977_v12 = vld [vmem:[%s4466_s2 + $0x70] sm:$0xff]  ;;  %v1027_v40 = vld [vmem:[%s4466_s2 + $0x200] sm:$0xff]  ;;  %v1028_v31 = vld [vmem:[%s4466_s2 + $0x208] sm:$0xff] }
  0x44   :  { %2700 = vmatpush3.bf16.msra.mxu1 %v2699_v13  ;;  %2670 = vmatprep.subr.bf16.mxu0 %v2669_v14  ;;  %v978_v13 = vld [vmem:[%s4466_s2 + $0x78] sm:$0xff]  ;;  %v2721_v14 = vpack.c.bf16 %v1026_v11, %v1025_v9  ;;  %v1059_v32 = vld [vmem:[%s4466_s2 + $0x300] sm:$0xff]  ;;  %v1060_v33 = vld [vmem:[%s4466_s2 + $0x308] sm:$0xff]  ;;  %v2727_v47 = vpack.c.bf16 %v1028_v31, %v1027_v40 }
  0x45   :  { %2197 = vmatmul.mubr.msk.f32.gmra.mrb[28].mxu0 %vm125_vm3, %v3200_v59  ;;  %2702 = vmatprep.subr.bf16.mxu1 %v2701_v18  ;;  %v2691_v27 = vpack.c.bf16 %v978_v13, %v977_v12  ;;  %v2723_v18 = vpack.c.bf16 %v1010_v17, %v1009_v15  ;;  %v1078_v41 = vld [vmem:[%s4466_s2 + $0x398] sm:$0xff]  ;;  %v1061_v55 = vld [vmem:[%s4466_s2 + $0x310] sm:$0xff]  ;;  %v1047_v63 = vld [vmem:[%s4466_s2 + $0x2a0] sm:$0xff] }
  0x46   :  { %2203 = vmatmul.mubr.msk.f32.gmra.mrb[28].mxu1 %vm125_vm3, %v3200_v59  ;;  %803 = vmatprep.mubr.f32.mxu0 %v2992_v7  ;;  %v971_v59 = vld [vmem:[%s4466_s2 + $0x40] sm:$0xff]  ;;  %v1062_v56 = vld [vmem:[%s4466_s2 + $0x318] sm:$0xff]  ;;  %v1048_v0 = vld [vmem:[%s4466_s2 + $0x2a8] sm:$0xff] }
  0x47   :  { %892 = vmatprep.mubr.f32.mxu1 %v2992_v7  ;;  %2672 = vmatpush3.bf16.msra.mxu0 %v2671_v24  ;;  %v2679_v48 = vpack.c.bf16 %v972_v39, %v971_v59  ;;  %v2757_v24 = vpack.c.bf16 %v1076_v23, %v1075_v21  ;;  %v1077_v39 = vld [vmem:[%s4466_s2 + $0x390] sm:$0xff]  ;;  %v1079_v2 = vld [vmem:[%s4466_s2 + $0x3a0] sm:$0xff]  ;;  %v1080_v3 = vld [vmem:[%s4466_s2 + $0x3a8] sm:$0xff]  ;;  %v2763_v8 = vpack.c.bf16 %v1062_v56, %v1061_v55 }
  0x48   :  { %2704 = vmatpush3.bf16.msra.mxu1 %v2703_v25  ;;  %2674 = vmatprep.subr.bf16.mxu0 %v2673_v26  ;;  %v1031_v9 = vld [vmem:[%s4466_s2 + $0x220] sm:$0xff]  ;;  %v2765_v21 = vpack.c.bf16 %v1080_v3, %v1079_v2  ;;  %v1064_v23 = vld [vmem:[%s4466_s2 + $0x328] sm:$0xff]  ;;  %v1050_v40 = vld [vmem:[%s4466_s2 + $0x2b8] sm:$0xff] }
  0x49   :  { %2198 = vmatmul.mubr.msk.f32.gmra.mrb[30].mxu0 %vm125_vm3, %v3215_v60  ;;  %2706 = vmatprep.subr.bf16.mxu1 %v2705_v30  ;;  %v1063_v15 = vld [vmem:[%s4466_s2 + $0x320] sm:$0xff]  ;;  %v1082_v31 = vld [vmem:[%s4466_s2 + $0x3b8] sm:$0xff]  ;;  %v1084_v55 = vld [vmem:[%s4466_s2 + $0x3c8] sm:$0xff] }
  0x4a   :  { %2204 = vmatmul.mubr.msk.f32.gmra.mrb[30].mxu1 %vm125_vm3, %v3215_v60  ;;  %v974_v60 = vld [vmem:[%s4466_s2 + $0x58] sm:$0xff]  ;;  %v1035_v3 = vld [vmem:[%s4466_s2 + $0x240] sm:$0xff] }
  0x4b   :  { %2676 = vmatpush3.bf16.msra.mxu0 %v2675_v36  ;;  %v2683_v58 = vpack.c.bf16 %v974_v60, %v973_v51 }
  0x4c   :  { %2708 = vmatpush3.bf16.msra.mxu1 %v2707_v37  ;;  %2678 = vmatprep.subr.bf16.mxu0 %v2677_v38  ;;  %v1045_v37 = vld [vmem:[%s4466_s2 + $0x290] sm:$0xff]  ;;  %v1046_v38 = vld [vmem:[%s4466_s2 + $0x298] sm:$0xff] }
  0x4d   :  { %2710 = vmatprep.subr.bf16.mxu1 %v2709_v42  ;;  %v2729_v16 = vpack.c.bf16 %v1046_v38, %v1045_v37 }
  0x4f   :  { %2680 = vmatpush3.bf16.msra.mxu0 %v2679_v48  ;;  %v2759_v48 = vpack.c.bf16 %v1060_v33, %v1059_v32 }
  0x50   :  { %2712 = vmatpush3.bf16.msra.mxu1 %v2711_v49  ;;  %2682 = vmatprep.subr.bf16.mxu0 %v2681_v50  ;;  %v1029_v49 = vld [vmem:[%s4466_s2 + $0x210] sm:$0xff]  ;;  %v1030_v50 = vld [vmem:[%s4466_s2 + $0x218] sm:$0xff] }
  0x51   :  { %2714 = vmatprep.subr.bf16.mxu1 %v2713_v53  ;;  %v2731_v6 = vpack.c.bf16 %v1030_v50, %v1029_v49  ;;  %v1066_v50 = vld [vmem:[%s4466_s2 + $0x338] sm:$0xff] }
  0x53   :  { %2684 = vmatpush3.bf16.msra.mxu0 %v2683_v58 }
  0x54   :  { %2716 = vmatpush3.bf16.msra.mxu1 %v2715_v61  ;;  %2686 = vmatprep.subr.bf16.mxu0 %v2685_v62  ;;  %v2761_v62 = vpack.c.bf16 %v1078_v41, %v1077_v39  ;;  %v1033_v41 = vld [vmem:[%s4466_s2 + $0x230] sm:$0xff] }
  0x55   :  { %2718 = vmatprep.subr.bf16.mxu1 %v2717_v1 }
  0x57   :  { %2688 = vmatpush3.bf16.msra.mxu0 %v2687_v4 }
  0x58   :  { %2720 = vmatpush3.bf16.msra.mxu1 %v2719_v5  ;;  %2690 = vmatprep.subr.bf16.mxu0 %v2689_v10 }
  0x59   :  { %2722 = vmatprep.subr.bf16.mxu1 %v2721_v14  ;;  %v2733_v14 = vpack.c.bf16 %v1048_v0, %v1047_v63 }
  0x5b   :  { %2692 = vmatpush3.bf16.msra.mxu0 %v2691_v27  ;;  %v1032_v27 = vld [vmem:[%s4466_s2 + $0x228] sm:$0xff] }
  0x5c   :  { %2724 = vmatpush3.bf16.msra.mxu1 %v2723_v18  ;;  %2726 = vmatprep.subr.bf16.mxu0 %v2725_v22 }
  0x5d   :  { %2758 = vmatprep.subr.bf16.mxu1 %v2757_v24 }
  0x96   :  { %v3613_v25 = vpop.permute.xlu0 %107 }
  0x97   :  { %v3643_v42 = vpop.permute.xlu1 %117 }
  0x9a   :  { %v3645_v43 = vpop.permute.xlu0 %112 }
  0x9b   :  { %v3686_v22 = vpop.permute.xlu1 %122 }
  0xe0   :  { %v253_v26 = vpop.f32.mrb[0].mxu0 }
  0xe1   :  { %v254_v28 = vadd.f32 %v253_v26, %v3613_v25  ;;  %v342_v29 = vpop.f32.mrb[0].mxu1  ;;  %v255_v30 = vpop.f32.mrb[1].mxu0  ;;  %v1049_v26 = vld [vmem:[%s4466_s2 + $0x2b0] sm:$0xff] }
  0xe2   :  { %v343_v34 = vadd.f32 %v342_v29, %v3613_v25  ;;  %v256_v35 = vadd.f32 %v255_v30, %v3613_v25  ;;  %v344_v36 = vpop.f32.mrb[1].mxu1  ;;  %v1081_v30 = vld [vmem:[%s4466_s2 + $0x3b0] sm:$0xff]  ;;  %v2737_v39 = vpack.c.bf16 %v1050_v40, %v1049_v26  ;;  %v1038_v40 = vld [vmem:[%s4466_s2 + $0x258] sm:$0xff] }
  0xe3   :  { %v345_v59 = vadd.f32 %v344_v36, %v3613_v25  ;;  %v899_v51 = vmax.f32 %v254_v28, 0.0  ;;  %v2769_v49 = vpack.c.bf16 %v1082_v31, %v1081_v30  ;;  %v1037_v26 = vld [vmem:[%s4466_s2 + $0x250] sm:$0xff]  ;;  %v1070_v31 = vld [vmem:[%s4466_s2 + $0x358] sm:$0xff] }
  0xe4   :  { %v901_v44 = vmax.f32 %v343_v34, 0.0  ;;  %v900_v45 = vmax.f32 %v256_v35, 0.0  ;;  %v259_v46 = vpop.f32.mrb[2].mxu0  ;;  %v2735_v34 = vpack.c.bf16 %v1032_v27, %v1031_v9  ;;  %v1086_v27 = vld [vmem:[%s4466_s2 + $0x3d8] sm:$0xff] }
  0xe5   :  { %v902_v60 = vmax.f32 %v345_v59, 0.0  ;;  %v260_v52 = vadd.f32 %v259_v46, %v3645_v43  ;;  %v348_v53 = vpop.f32.mrb[2].mxu1  ;;  %v261_v54 = vpop.f32.mrb[3].mxu0  ;;  %v2767_v59 = vpack.c.bf16 %v1064_v23, %v1063_v15 }
  0xe6   :  { %v349_v57 = vadd.f32 %v348_v53, %v3645_v43  ;;  %v262_v58 = vadd.f32 %v261_v54, %v3645_v43  ;;  %v350_v61 = vpop.f32.mrb[3].mxu1  ;;  %1283 = vmatprep.mubr.f32.mxu0 %v900_v45  ;;  %v1065_v45 = vld [vmem:[%s4466_s2 + $0x330] sm:$0xff] }
  0xe7   :  { %v351_v1 = vadd.f32 %v350_v61, %v3645_v43  ;;  %1368 = vmatprep.mubr.f32.mxu1 %v902_v60  ;;  %1284 = vmatmul.mubr.f32.vlgmr.msra.gmra.mrb[32].mxu0 %v899_v51  ;;  %v915_v10 = vmax.f32 %v260_v52, 0.0  ;;  %v1051_v60 = vld [vmem:[%s4466_s2 + $0x2c0] sm:$0xff]  ;;  %v1052_v52 = vld [vmem:[%s4466_s2 + $0x2c8] sm:$0xff] }
  0xe8   :  { %v916_v4 = vmax.f32 %v262_v58, 0.0  ;;  %1369 = vmatmul.mubr.f32.vlgmr.msra.gmra.mrb[32].mxu1 %v901_v44  ;;  %2728 = vmatpush3.bf16.msra.mxu0 %v2727_v47  ;;  %v265_v5 = vpop.f32.mrb[4].mxu0  ;;  %v917_v18 = vmax.f32 %v349_v57, 0.0  ;;  %v1034_v44 = vld [vmem:[%s4466_s2 + $0x238] sm:$0xff]  ;;  %v2741_v2 = vpack.c.bf16 %v1052_v52, %v1051_v60  ;;  %v1089_v60 = vld [vmem:[%s4466_s2 + $0x3f0] sm:$0xff] }
  0xe9   :  { %v918_v11 = vmax.f32 %v351_v1, 0.0  ;;  %2760 = vmatpush3.bf16.msra.mxu1 %v2759_v48  ;;  %v354_v12 = vpop.f32.mrb[4].mxu1  ;;  %2730 = vmatprep.subr.bf16.mxu0 %v2729_v16  ;;  %v267_v13 = vpop.f32.mrb[5].mxu0  ;;  %v266_v17 = vadd.f32 %v265_v5, %v3643_v42  ;;  %v1083_v16 = vld [vmem:[%s4466_s2 + $0x3c0] sm:$0xff]  ;;  %v2739_v58 = vpack.c.bf16 %v1034_v44, %v1033_v41  ;;  %v2771_v1 = vpack.c.bf16 %v1066_v50, %v1065_v45  ;;  %v1040_v45 = vld [vmem:[%s4466_s2 + $0x268] sm:$0xff]  ;;  %v1057_v50 = vld [vmem:[%s4466_s2 + $0x2f0] sm:$0xff] }
  0xea   :  { %1288 = vmatprep.mubr.f32.mxu0 %v916_v4  ;;  %2762 = vmatprep.subr.bf16.mxu1 %v2761_v62  ;;  %v268_v19 = vadd.f32 %v267_v13, %v3643_v42  ;;  %v356_v20 = vpop.f32.mrb[5].mxu1  ;;  %v355_v24 = vadd.f32 %v354_v12, %v3643_v42  ;;  %v1036_v4 = vld [vmem:[%s4466_s2 + $0x248] sm:$0xff]  ;;  %v1067_v5 = vld [vmem:[%s4466_s2 + $0x340] sm:$0xff]  ;;  %v2773_v9 = vpack.c.bf16 %v1084_v55, %v1083_v16  ;;  %v1054_v12 = vld [vmem:[%s4466_s2 + $0x2d8] sm:$0xff] }
  0xeb   :  { %1373 = vmatprep.mubr.f32.mxu1 %v918_v11  ;;  %v357_v28 = vadd.f32 %v356_v20, %v3643_v42  ;;  %1289 = vmatmul.mubr.f32.gmra.mrb[34].mxu0 %v915_v10  ;;  %v931_v29 = vmax.f32 %v266_v17, 0.0  ;;  %v1068_v10 = vld [vmem:[%s4466_s2 + $0x348] sm:$0xff]  ;;  %v1053_v11 = vld [vmem:[%s4466_s2 + $0x2d0] sm:$0xff]  ;;  %v1039_v44 = vld [vmem:[%s4466_s2 + $0x260] sm:$0xff] }
  0xec   :  { %v932_v32 = vmax.f32 %v268_v19, 0.0  ;;  %1374 = vmatmul.mubr.f32.gmra.mrb[34].mxu1 %v917_v18  ;;  %2732 = vmatpush3.bf16.msra.mxu0 %v2731_v6  ;;  %v271_v33 = vpop.f32.mrb[6].mxu0  ;;  %v933_v35 = vmax.f32 %v355_v24, 0.0  ;;  %v2743_v18 = vpack.c.bf16 %v1036_v4, %v1035_v3  ;;  %v2775_v23 = vpack.c.bf16 %v1068_v10, %v1067_v5  ;;  %v1090_v52 = vld [vmem:[%s4466_s2 + $0x3f8] sm:$0xff]  ;;  %v1107_v4 = vld [vmem:[%s4466_s2 + $0x480] sm:$0xff]  ;;  %v1108_v5 = vld [vmem:[%s4466_s2 + $0x488] sm:$0xff] }
  0xed   :  { %v934_v36 = vmax.f32 %v357_v28, 0.0  ;;  %2764 = vmatpush3.bf16.msra.mxu1 %v2763_v8  ;;  %v360_v37 = vpop.f32.mrb[6].mxu1  ;;  %2734 = vmatprep.subr.bf16.mxu0 %v2733_v14  ;;  %v273_v38 = vpop.f32.mrb[7].mxu0  ;;  %v272_v46 = vadd.f32 %v271_v33, %v3686_v22  ;;  %v1085_v14 = vld [vmem:[%s4466_s2 + $0x3d0] sm:$0xff]  ;;  %v2745_v24 = vpack.c.bf16 %v1054_v12, %v1053_v11  ;;  %v1056_v33 = vld [vmem:[%s4466_s2 + $0x2e8] sm:$0xff]  ;;  %v1074_v3 = vld [vmem:[%s4466_s2 + $0x378] sm:$0xff] }
  0xee   :  { %2766 = vmatprep.subr.bf16.mxu1 %v2765_v21  ;;  %v274_v47 = vadd.f32 %v273_v38, %v3686_v22  ;;  %v362_v48 = vpop.f32.mrb[7].mxu1  ;;  %1293 = vmatprep.mubr.f32.mxu0 %v932_v32  ;;  %v361_v51 = vadd.f32 %v360_v37, %v3686_v22  ;;  %v1069_v28 = vld [vmem:[%s4466_s2 + $0x350] sm:$0xff]  ;;  %v2777_v30 = vpack.c.bf16 %v1086_v27, %v1085_v14  ;;  %v1055_v32 = vld [vmem:[%s4466_s2 + $0x2e0] sm:$0xff] }
  0xef   :  { %v363_v53 = vadd.f32 %v362_v48, %v3686_v22  ;;  %1378 = vmatprep.mubr.f32.mxu1 %v934_v36  ;;  %1294 = vmatmul.mubr.f32.gmra.mrb[36].mxu0 %v931_v29  ;;  %v947_v54 = vmax.f32 %v272_v46, 0.0  ;;  %v2747_v37 = vpack.c.bf16 %v1038_v40, %v1037_v26  ;;  %v2749_v41 = vpack.c.bf16 %v1056_v33, %v1055_v32  ;;  %v1071_v46 = vld [vmem:[%s4466_s2 + $0x360] sm:$0xff]  ;;  %v1124_v40 = vld [vmem:[%s4466_s2 + $0x508] sm:$0xff]  ;;  %v1141_v32 = vld [vmem:[%s4466_s2 + $0x590] sm:$0xff] }
  0xf0   :  { %v948_v56 = vmax.f32 %v274_v47, 0.0  ;;  %2736 = vmatpush3.bf16.msra.mxu0 %v2735_v34  ;;  %v3733_v57 = vpop.f32.mrb[8].mxu0  ;;  %1379 = vmatmul.mubr.f32.gmra.mrb[36].mxu1 %v933_v35  ;;  %v949_v61 = vmax.f32 %v361_v51, 0.0  ;;  %v1087_v34 = vld [vmem:[%s4466_s2 + $0x3e0] sm:$0xff]  ;;  %v1088_v35 = vld [vmem:[%s4466_s2 + $0x3e8] sm:$0xff]  ;;  %v1058_v51 = vld [vmem:[%s4466_s2 + $0x2f8] sm:$0xff]  ;;  %v2789_v27 = vpack.c.bf16 %v1108_v5, %v1107_v4 }
  0xf1   :  { %v950_v62 = vmax.f32 %v363_v53, 0.0  ;;  %2768 = vmatpush3.bf16.msra.mxu1 %v2767_v59  ;;  %v3735_v63 = vpop.f32.mrb[8].mxu1  ;;  %v433_v0 = vpop.f32.mrb[9].mxu0  ;;  %2738 = vmatprep.subr.bf16.mxu0 %v2737_v39  ;;  %v2779_v39 = vpack.c.bf16 %v1070_v31, %v1069_v28  ;;  %v2781_v48 = vpack.c.bf16 %v1088_v35, %v1087_v34  ;;  %v432_v11 = vadd.f32 %v3733_v57, %v3613_v25  ;;  %v1123_v57 = vld [vmem:[%s4466_s2 + $0x500] sm:$0xff]  ;;  %v1109_v28 = vld [vmem:[%s4466_s2 + $0x490] sm:$0xff]  ;;  %v1142_v33 = vld [vmem:[%s4466_s2 + $0x598] sm:$0xff] }
  0xf2   :  { %v434_v6 = vadd.f32 %v433_v0, %v3613_v25  ;;  %v522_v8 = vpop.f32.mrb[9].mxu1  ;;  %2770 = vmatprep.subr.bf16.mxu1 %v2769_v49  ;;  %1298 = vmatprep.mubr.f32.mxu0 %v948_v56  ;;  %v1072_v49 = vld [vmem:[%s4466_s2 + $0x368] sm:$0xff]  ;;  %v1073_v0 = vld [vmem:[%s4466_s2 + $0x370] sm:$0xff] }
  0xf3   :  { %v523_v13 = vadd.f32 %v522_v8, %v3613_v25  ;;  %1383 = vmatprep.mubr.f32.mxu1 %v950_v62  ;;  %1299 = vmatmul.mubr.f32.gmra.mrb[38].mxu0 %v947_v54  ;;  %v2751_v54 = vpack.c.bf16 %v1040_v45, %v1039_v44  ;;  %v2783_v56 = vpack.c.bf16 %v1072_v49, %v1071_v46  ;;  %v1042_v62 = vld [vmem:[%s4466_s2 + $0x278] sm:$0xff]  ;;  %v1140_v8 = vld [vmem:[%s4466_s2 + $0x588] sm:$0xff]  ;;  %v903_v34 = vmax.f32 %v432_v11, 0.0  ;;  %v1093_v44 = vld [vmem:[%s4466_s2 + $0x410] sm:$0xff] }
  0xf4   :  { %v904_v15 = vmax.f32 %v434_v6, 0.0  ;;  %2740 = vmatpush3.bf16.msra.mxu0 %v2739_v58  ;;  %v3763_v17 = vpop.f32.mrb[10].mxu0  ;;  %1384 = vmatmul.mubr.f32.gmra.mrb[38].mxu1 %v949_v61  ;;  %v2753_v58 = vpack.c.bf16 %v1058_v51, %v1057_v50  ;;  %v1041_v61 = vld [vmem:[%s4466_s2 + $0x270] sm:$0xff]  ;;  %v1139_v6 = vld [vmem:[%s4466_s2 + $0x580] sm:$0xff]  ;;  %v2787_v14 = vpack.c.bf16 %v1074_v3, %v1073_v0  ;;  %v1094_v45 = vld [vmem:[%s4466_s2 + $0x418] sm:$0xff] }
  0xf5   :  { %v906_v19 = vmax.f32 %v523_v13, 0.0  ;;  %2772 = vmatpush3.bf16.msra.mxu1 %v2771_v1  ;;  %v3765_v20 = vpop.f32.mrb[10].mxu1  ;;  %v3767_v21 = vpop.f32.mrb[11].mxu0  ;;  %2742 = vmatprep.subr.bf16.mxu0 %v2741_v2  ;;  %v2785_v2 = vpack.c.bf16 %v1090_v52, %v1089_v60  ;;  %v2755_v10 = vpack.c.bf16 %v1042_v62, %v1041_v61  ;;  %v2821_v26 = vpack.c.bf16 %v1140_v8, %v1139_v6  ;;  %v1125_v51 = vld [vmem:[%s4466_s2 + $0x510] sm:$0xff]  ;;  %v1126_v60 = vld [vmem:[%s4466_s2 + $0x518] sm:$0xff]  ;;  %v1111_v52 = vld [vmem:[%s4466_s2 + $0x4a0] sm:$0xff] }
  0xf6   :  { %v3778_v29 = vpop.f32.mrb[11].mxu1  ;;  %1453 = vmatprep.mubr.f32.mxu0 %v904_v15  ;;  %2774 = vmatprep.subr.bf16.mxu1 %v2773_v9  ;;  %v1091_v15 = vld [vmem:[%s4466_s2 + $0x400] sm:$0xff]  ;;  %v438_v35 = vadd.f32 %v3763_v17, %v3645_v43  ;;  %v527_v17 = vadd.f32 %v3765_v20, %v3645_v43  ;;  %v1144_v61 = vld [vmem:[%s4466_s2 + $0x5a8] sm:$0xff]  ;;  %v2795_v0 = vpack.c.bf16 %v1094_v45, %v1093_v44 }
  0xf7   :  { %1538 = vmatprep.mubr.f32.mxu1 %v906_v19  ;;  %v521_v19 = vadd.f32 %v3735_v63, %v3613_v25  ;;  %v529_v63 = vadd.f32 %v3778_v29, %v3645_v43  ;;  %v3954_v3 = vld [vmem:[%s4466_s2 + $0x520] sm:$0xff]  ;;  %v2827_v11 = vpack.c.bf16 %v1126_v60, %v1125_v51 }
  0xf8   :  { %2744 = vmatpush3.bf16.msra.mxu0 %v2743_v18  ;;  %v3795_v36 = vpop.f32.mrb[12].mxu0  ;;  %v1092_v18 = vld [vmem:[%s4466_s2 + $0x408] sm:$0xff]  ;;  %v919_v4 = vmax.f32 %v438_v35, 0.0 }
  0xf9   :  { %2776 = vmatpush3.bf16.msra.mxu1 %v2775_v23  ;;  %v3797_v38 = vpop.f32.mrb[12].mxu1  ;;  %v3799_v59 = vpop.f32.mrb[13].mxu0  ;;  %2746 = vmatprep.subr.bf16.mxu0 %v2745_v24  ;;  %v440_v23 = vadd.f32 %v3767_v21, %v3645_v43  ;;  %v2791_v31 = vpack.c.bf16 %v1092_v18, %v1091_v15  ;;  %v905_v46 = vmax.f32 %v521_v19, 0.0  ;;  %v922_v20 = vmax.f32 %v529_v63, 0.0 }
  0xfa   :  { %v3810_v47 = vpop.f32.mrb[13].mxu1  ;;  %2778 = vmatprep.subr.bf16.mxu1 %v2777_v30  ;;  %v1110_v30 = vld [vmem:[%s4466_s2 + $0x498] sm:$0xff]  ;;  %v446_v49 = vadd.f32 %v3799_v59, %v3643_v42  ;;  %v2825_v59 = vpack.c.bf16 %v1142_v33, %v1141_v32  ;;  %v444_v5 = vadd.f32 %v3795_v36, %v3643_v42  ;;  %v533_v6 = vadd.f32 %v3797_v38, %v3643_v42 }
  0xfb   :  { %v3977_v36 = vld [vmem:[%s4466_s2 + $0x4b8] sm:$0xff]  ;;  %v921_v38 = vmax.f32 %v527_v17, 0.0 }
  0xfc   :  { %2748 = vmatpush3.bf16.msra.mxu0 %v2747_v37  ;;  %v3827_v53 = vpop.f32.mrb[14].mxu0  ;;  %v936_v15 = vmax.f32 %v446_v49, 0.0  ;;  %v935_v32 = vmax.f32 %v444_v5, 0.0  ;;  %v937_v33 = vmax.f32 %v533_v6, 0.0  ;;  %v1098_v49 = vld [vmem:[%s4466_s2 + $0x438] sm:$0xff] }
  0xfd   :  { %2780 = vmatpush3.bf16.msra.mxu1 %v2779_v39  ;;  %v3829_v16 = vpop.f32.mrb[14].mxu1  ;;  %v3831_v55 = vpop.f32.mrb[15].mxu0  ;;  %2750 = vmatprep.subr.bf16.mxu0 %v2749_v41  ;;  %v2823_v39 = vpack.c.bf16 %v1124_v40, %v1123_v57  ;;  %v2793_v41 = vpack.c.bf16 %v1110_v30, %v1109_v28 }
  0xfe   :  { %v3842_v1 = vpop.f32.mrb[15].mxu1  ;;  %2782 = vmatprep.subr.bf16.mxu1 %v2781_v48  ;;  %v920_v48 = vmax.f32 %v440_v23, 0.0  ;;  %v452_v18 = vadd.f32 %v3831_v55, %v3686_v22  ;;  %v539_v44 = vadd.f32 %v3829_v16, %v3686_v22  ;;  %v1129_v16 = vld [vmem:[%s4466_s2 + $0x530] sm:$0xff] }
 0x100   :  { %2752 = vmatpush3.bf16.msra.mxu0 %v2751_v54  ;;  %v3859_v9 = vpop.f32.mrb[16].mxu0  ;;  %v535_v54 = vadd.f32 %v3810_v47, %v3643_v42  ;;  %v3944_v47 = vld [vmem:[%s4466_s2 + $0x420] sm:$0xff]  ;;  %v952_v45 = vmax.f32 %v452_v18, 0.0  ;;  %v1132_v18 = vld [vmem:[%s4466_s2 + $0x548] sm:$0xff] }
 0x101   :  { %2784 = vmatpush3.bf16.msra.mxu1 %v2783_v56  ;;  %v3863_v12 = vpop.f32.mrb[16].mxu1  ;;  %v3865_v13 = vpop.f32.mrb[17].mxu0  ;;  %2754 = vmatprep.subr.bf16.mxu0 %v2753_v58  ;;  %v1112_v56 = vld [vmem:[%s4466_s2 + $0x4a8] sm:$0xff]  ;;  %v1143_v58 = vld [vmem:[%s4466_s2 + $0x5a0] sm:$0xff] }
 0x102   :  { %v3880_v24 = vpop.f32.mrb[17].mxu1  ;;  %2786 = vmatprep.subr.bf16.mxu1 %v2785_v2  ;;  %v3949_v2 = vld [vmem:[%s4466_s2 + $0x428] sm:$0xff]  ;;  %v2797_v19 = vpack.c.bf16 %v1112_v56, %v1111_v52  ;;  %v938_v23 = vmax.f32 %v535_v54, 0.0  ;;  %v2829_v40 = vpack.c.bf16 %v1144_v61, %v1143_v58  ;;  %v1115_v54 = vld [vmem:[%s4466_s2 + $0x4c0] sm:$0xff] }
 0x103   :  { %v2799_v30 = vpack.c.bf16 %v3949_v2, %v3944_v47  ;;  %v1147_v56 = vld [vmem:[%s4466_s2 + $0x5c0] sm:$0xff]  ;;  %v1148_v58 = vld [vmem:[%s4466_s2 + $0x5c8] sm:$0xff] }
 0x104   :  { %2756 = vmatpush3.bf16.msra.mxu0 %v2755_v10  ;;  %v3893_v21 = vpop.f32.mrb[18].mxu0 }
 0x105   :  { %2788 = vmatpush3.bf16.msra.mxu1 %v2787_v14  ;;  %v3903_v37 = vpop.f32.mrb[18].mxu1  ;;  %v3905_v29 = vpop.f32.mrb[19].mxu0  ;;  %2790 = vmatprep.subr.bf16.mxu0 %v2789_v27  ;;  %v3967_v14 = vld [vmem:[%s4466_s2 + $0x528] sm:$0xff]  ;;  %v3972_v27 = vld [vmem:[%s4466_s2 + $0x4b0] sm:$0xff] }
 0x106   :  { %v3917_v50 = vpop.f32.mrb[19].mxu1  ;;  %2822 = vmatprep.subr.bf16.mxu1 %v2821_v26  ;;  %v541_v26 = vadd.f32 %v3842_v1, %v3686_v22  ;;  %v2831_v55 = vpack.c.bf16 %v3967_v14, %v3954_v3  ;;  %v2801_v63 = vpack.c.bf16 %v3977_v36, %v3972_v27  ;;  %v1146_v1 = vld [vmem:[%s4466_s2 + $0x5b8] sm:$0xff]  ;;  %v953_v3 = vmax.f32 %v539_v44, 0.0  ;;  %v1099_v14 = vld [vmem:[%s4466_s2 + $0x440] sm:$0xff]  ;;  %v1100_v27 = vld [vmem:[%s4466_s2 + $0x448] sm:$0xff] }
 0x107   :  { %1454 = vmatmul.mubr.f32.vlgmr.msra.gmra.mrb[40].mxu0 %v903_v34  ;;  %v450_v34 = vadd.f32 %v3827_v53, %v3686_v22  ;;  %v1131_v36 = vld [vmem:[%s4466_s2 + $0x540] sm:$0xff] }
 0x108   :  { %1539 = vmatmul.mubr.f32.vlgmr.msra.gmra.mrb[40].mxu1 %v905_v46  ;;  %1458 = vmatprep.mubr.f32.mxu0 %v920_v48  ;;  %v3939_v62 = vpop.f32.mrb[20].mxu0  ;;  %v612_v46 = vadd.f32 %v3865_v13, %v3613_v25  ;;  %v1097_v48 = vld [vmem:[%s4466_s2 + $0x430] sm:$0xff]  ;;  %v954_v51 = vmax.f32 %v541_v26, 0.0  ;;  %v701_v13 = vadd.f32 %v3880_v24, %v3613_v25 }
 0x109   :  { %1543 = vmatprep.mubr.f32.mxu1 %v922_v20  ;;  %2792 = vmatpush3.bf16.msra.mxu0 %v2791_v31  ;;  %v3960_v8 = vpop.f32.mrb[20].mxu1  ;;  %v3962_v10 = vpop.f32.mrb[21].mxu0  ;;  %v1145_v31 = vld [vmem:[%s4466_s2 + $0x5b0] sm:$0xff]  ;;  %v1130_v20 = vld [vmem:[%s4466_s2 + $0x538] sm:$0xff]  ;;  %v951_v61 = vmax.f32 %v450_v34, 0.0  ;;  %v2803_v2 = vpack.c.bf16 %v1098_v49, %v1097_v48  ;;  %v1151_v49 = vld [vmem:[%s4466_s2 + $0x5e0] sm:$0xff] }
 0x10a   :  { %2824 = vmatpush3.bf16.msra.mxu1 %v2823_v39  ;;  %v3981_v57 = vpop.f32.mrb[21].mxu1  ;;  %2794 = vmatprep.subr.bf16.mxu0 %v2793_v41  ;;  %v2833_v52 = vpack.c.bf16 %v1146_v1, %v1145_v31  ;;  %v2835_v6 = vpack.c.bf16 %v1130_v20, %v1129_v16  ;;  %v2839_v1 = vpack.c.bf16 %v1132_v18, %v1131_v36  ;;  %v1102_v34 = vld [vmem:[%s4466_s2 + $0x458] sm:$0xff]  ;;  %v1152_v16 = vld [vmem:[%s4466_s2 + $0x5e8] sm:$0xff]  ;;  %v1103_v20 = vld [vmem:[%s4466_s2 + $0x460] sm:$0xff] }
 0x10b   :  { %1459 = vmatmul.mubr.f32.gmra.mrb[42].mxu0 %v919_v4  ;;  %2826 = vmatprep.subr.bf16.mxu1 %v2825_v59  ;;  %v1116_v59 = vld [vmem:[%s4466_s2 + $0x4c8] sm:$0xff]  ;;  %v908_v4 = vmax.f32 %v612_v46, 0.0  ;;  %v1119_v46 = vld [vmem:[%s4466_s2 + $0x4e0] sm:$0xff] }
 0x10c   :  { %1544 = vmatmul.mubr.f32.gmra.mrb[42].mxu1 %v921_v38  ;;  %1463 = vmatprep.mubr.f32.mxu0 %v936_v15  ;;  %v627_v28 = vpop.f32.mrb[22].mxu0  ;;  %v910_v38 = vmax.f32 %v701_v13, 0.0  ;;  %v2837_v15 = vpack.c.bf16 %v1148_v58, %v1147_v56  ;;  %v1104_v58 = vld [vmem:[%s4466_s2 + $0x468] sm:$0xff] }
 0x10d   :  { %1548 = vmatprep.mubr.f32.mxu1 %v938_v23  ;;  %2796 = vmatpush3.bf16.msra.mxu0 %v2795_v0  ;;  %v4000_v35 = vadd.f32 %v627_v28, %v3686_v22  ;;  %v716_v39 = vpop.f32.mrb[22].mxu1  ;;  %v4002_v41 = vpop.f32.mrb[23].mxu0  ;;  %v1118_v23 = vld [vmem:[%s4466_s2 + $0x4d8] sm:$0xff]  ;;  %v2815_v18 = vpack.c.bf16 %v1104_v58, %v1103_v20  ;;  %v1156_v58 = vld [vmem:[%s4466_s2 + $0x608] sm:$0xff] }
 0x10e   :  { %2828 = vmatpush3.bf16.msra.mxu1 %v2827_v11  ;;  %v4009_v17 = vadd.f32 %v716_v39, %v3686_v22  ;;  %v718_v53 = vpop.f32.mrb[23].mxu1  ;;  %2798 = vmatprep.subr.bf16.mxu0 %v2797_v19  ;;  %v2805_v11 = vpack.c.bf16 %v1116_v59, %v1115_v54  ;;  %v1117_v19 = vld [vmem:[%s4466_s2 + $0x4d0] sm:$0xff]  ;;  %v1150_v28 = vld [vmem:[%s4466_s2 + $0x5d8] sm:$0xff] }
 0x10f   :  { %v4023_v60 = vadd.f32 %v718_v53, %v3686_v22  ;;  %1464 = vmatmul.mubr.f32.gmra.mrb[44].mxu0 %v935_v32  ;;  %2830 = vmatprep.subr.bf16.mxu1 %v2829_v40  ;;  %v1149_v40 = vld [vmem:[%s4466_s2 + $0x5d0] sm:$0xff]  ;;  %v2809_v32 = vpack.c.bf16 %v1118_v23, %v1117_v19  ;;  %v1120_v53 = vld [vmem:[%s4466_s2 + $0x4e8] sm:$0xff] }
 0x110   :  { %1549 = vmatmul.mubr.f32.gmra.mrb[44].mxu1 %v937_v33  ;;  %1468 = vmatprep.mubr.f32.mxu0 %v952_v45  ;;  %v4034_v24 = vpop.f32.mrb[24].mxu0  ;;  %v1101_v33 = vld [vmem:[%s4466_s2 + $0x450] sm:$0xff]  ;;  %v2841_v44 = vpack.c.bf16 %v1150_v28, %v1149_v40  ;;  %v1134_v45 = vld [vmem:[%s4466_s2 + $0x558] sm:$0xff]  ;;  %v2813_v56 = vpack.c.bf16 %v1120_v53, %v1119_v46  ;;  %v1172_v46 = vld [vmem:[%s4466_s2 + $0x688] sm:$0xff] }
 0x111   :  { %1553 = vmatprep.mubr.f32.mxu1 %v954_v51  ;;  %2800 = vmatpush3.bf16.msra.mxu0 %v2799_v30  ;;  %v4042_v0 = vpop.f32.mrb[24].mxu1  ;;  %v4044_v47 = vpop.f32.mrb[25].mxu0  ;;  %v1133_v39 = vld [vmem:[%s4466_s2 + $0x550] sm:$0xff]  ;;  %v1203_v53 = vld [vmem:[%s4466_s2 + $0x780] sm:$0xff] }
 0x112   :  { %2832 = vmatpush3.bf16.msra.mxu1 %v2831_v55  ;;  %v4046_v5 = vpop.f32.mrb[25].mxu1  ;;  %2802 = vmatprep.subr.bf16.mxu0 %v2801_v63  ;;  %v2807_v63 = vpack.c.bf16 %v1100_v27, %v1099_v14  ;;  %v2843_v59 = vpack.c.bf16 %v1134_v45, %v1133_v39  ;;  %v1153_v14 = vld [vmem:[%s4466_s2 + $0x5f0] sm:$0xff]  ;;  %v1154_v27 = vld [vmem:[%s4466_s2 + $0x5f8] sm:$0xff]  ;;  %v1171_v45 = vld [vmem:[%s4466_s2 + $0x680] sm:$0xff] }
 0x113   :  { %1469 = vmatmul.mubr.f32.gmra.mrb[46].mxu0 %v951_v61  ;;  %2834 = vmatprep.subr.bf16.mxu1 %v2833_v52  ;;  %v2811_v52 = vpack.c.bf16 %v1102_v34, %v1101_v33  ;;  %v1135_v61 = vld [vmem:[%s4466_s2 + $0x560] sm:$0xff]  ;;  %v1137_v33 = vld [vmem:[%s4466_s2 + $0x570] sm:$0xff]  ;;  %v2849_v39 = vpack.c.bf16 %v1154_v27, %v1153_v14  ;;  %v1206_v27 = vld [vmem:[%s4466_s2 + $0x798] sm:$0xff] }
 0x114   :  { %1554 = vmatmul.mubr.f32.gmra.mrb[46].mxu1 %v953_v3  ;;  %1623 = vmatprep.mubr.f32.mxu0 %v908_v4  ;;  %v4066_v26 = vpop.f32.mrb[26].mxu0  ;;  %v2845_v3 = vpack.c.bf16 %v1152_v16, %v1151_v49  ;;  %v1121_v4 = vld [vmem:[%s4466_s2 + $0x4f0] sm:$0xff]  ;;  %v1204_v49 = vld [vmem:[%s4466_s2 + $0x788] sm:$0xff] }
 0x115   :  { %2804 = vmatpush3.bf16.msra.mxu0 %v2803_v2  ;;  %1708 = vmatprep.mubr.f32.mxu1 %v910_v38  ;;  %v4074_v30 = vpop.f32.mrb[26].mxu1  ;;  %v4076_v55 = vpop.f32.mrb[27].mxu0  ;;  %v1136_v2 = vld [vmem:[%s4466_s2 + $0x568] sm:$0xff] }
 0x116   :  { %2836 = vmatpush3.bf16.msra.mxu1 %v2835_v6  ;;  %v4078_v31 = vpop.f32.mrb[27].mxu1  ;;  %2806 = vmatprep.subr.bf16.mxu0 %v2805_v11  ;;  %v1122_v6 = vld [vmem:[%s4466_s2 + $0x4f8] sm:$0xff]  ;;  %v2847_v19 = vpack.c.bf16 %v1136_v2, %v1135_v61  ;;  %v1187_v61 = vld [vmem:[%s4466_s2 + $0x700] sm:$0xff]  ;;  %v699_v2 = vadd.f32 %v3863_v12, %v3613_v25  ;;  %v707_v12 = vadd.f32 %v3917_v50, %v3645_v43  ;;  %v1157_v50 = vld [vmem:[%s4466_s2 + $0x610] sm:$0xff] }
 0x117   :  { %2838 = vmatprep.subr.bf16.mxu1 %v2837_v15 }
 0x118   :  { %v4098_v48 = vpop.f32.mrb[28].mxu0 }
 0x119   :  { %2808 = vmatpush3.bf16.msra.mxu0 %v2807_v63  ;;  %v4106_v51 = vpop.f32.mrb[28].mxu1  ;;  %v4108_v13 = vpop.f32.mrb[29].mxu0  ;;  %v2817_v63 = vpack.c.bf16 %v1122_v6, %v1121_v4  ;;  %v1188_v4 = vld [vmem:[%s4466_s2 + $0x708] sm:$0xff]  ;;  %v1173_v6 = vld [vmem:[%s4466_s2 + $0x690] sm:$0xff] }
 0x11a   :  { %2840 = vmatpush3.bf16.msra.mxu1 %v2839_v1  ;;  %v4113_v54 = vpop.f32.mrb[29].mxu1  ;;  %2810 = vmatprep.subr.bf16.mxu0 %v2809_v32  ;;  %v1105_v1 = vld [vmem:[%s4466_s2 + $0x470] sm:$0xff]  ;;  %v1106_v32 = vld [vmem:[%s4466_s2 + $0x478] sm:$0xff] }
 0x11b   :  { %2842 = vmatprep.subr.bf16.mxu1 %v2841_v44  ;;  %v1138_v44 = vld [vmem:[%s4466_s2 + $0x578] sm:$0xff]  ;;  %v2819_v16 = vpack.c.bf16 %v1106_v32, %v1105_v1  ;;  %v909_v1 = vmax.f32 %v699_v2, 0.0 }
 0x11c   :  { %v805_v11 = vpop.f32.mrb[30].mxu0  ;;  %v2851_v20 = vpack.c.bf16 %v1138_v44, %v1137_v33  ;;  %v624_v33 = vadd.f32 %v3962_v10, %v3643_v42  ;;  %v1175_v44 = vld [vmem:[%s4466_s2 + $0x6a0] sm:$0xff] }
 0x11d   :  { %2812 = vmatpush3.bf16.msra.mxu0 %v2811_v52  ;;  %v4137_v36 = vadd.f32 %v805_v11, %v3686_v22  ;;  %v894_v38 = vpop.f32.mrb[30].mxu1  ;;  %v807_v15 = vpop.f32.mrb[31].mxu0  ;;  %v610_v52 = vadd.f32 %v3859_v9, %v3613_v25  ;;  %v618_v9 = vadd.f32 %v3905_v29, %v3645_v43  ;;  %v1174_v11 = vld [vmem:[%s4466_s2 + $0x698] sm:$0xff]  ;;  %v1205_v29 = vld [vmem:[%s4466_s2 + $0x790] sm:$0xff] }
 0x11e   :  { %2844 = vmatpush3.bf16.msra.mxu1 %v2843_v59  ;;  %v4140_v23 = vadd.f32 %v894_v38, %v3686_v22  ;;  %v4143_v40 = vadd.f32 %v807_v15, %v3686_v22  ;;  %v896_v28 = vpop.f32.mrb[31].mxu1  ;;  %2814 = vmatprep.subr.bf16.mxu0 %v2813_v56  ;;  %v2853_v59 = vpack.c.bf16 %v1172_v46, %v1171_v45  ;;  %v1155_v56 = vld [vmem:[%s4466_s2 + $0x600] sm:$0xff]  ;;  %v1176_v45 = vld [vmem:[%s4466_s2 + $0x6a8] sm:$0xff]  ;;  %v926_v46 = vmax.f32 %v707_v12, 0.0  ;;  %v1210_v12 = vld [vmem:[%s4466_s2 + $0x7b8] sm:$0xff] }
 0x11f   :  { %v4155_v34 = vadd.f32 %v896_v28, %v3686_v22  ;;  %2846 = vmatprep.subr.bf16.mxu1 %v2845_v3  ;;  %v2885_v3 = vpack.c.bf16 %v1204_v49, %v1203_v53  ;;  %v2855_v14 = vpack.c.bf16 %v1156_v58, %v1155_v56  ;;  %v907_v38 = vmax.f32 %v610_v52, 0.0  ;;  %v1158_v28 = vld [vmem:[%s4466_s2 + $0x618] sm:$0xff]  ;;  %v1207_v49 = vld [vmem:[%s4466_s2 + $0x7a0] sm:$0xff] }
 0x120   :  { %v616_v15 = vadd.f32 %v3893_v21, %v3645_v43  ;;  %v705_v21 = vadd.f32 %v3903_v37, %v3645_v43  ;;  %v924_v32 = vmax.f32 %v618_v9, 0.0  ;;  %v713_v37 = vadd.f32 %v3981_v57, %v3643_v42  ;;  %v1159_v56 = vld [vmem:[%s4466_s2 + $0x620] sm:$0xff] }
 0x121   :  { %2816 = vmatpush3.bf16.msra.mxu0 %v2815_v18  ;;  %v2887_v18 = vpack.c.bf16 %v1188_v4, %v1187_v61  ;;  %v2889_v53 = vpack.c.bf16 %v1206_v27, %v1205_v29  ;;  %v2859_v10 = vpack.c.bf16 %v1158_v28, %v1157_v50  ;;  %v711_v61 = vadd.f32 %v3960_v8, %v3643_v42  ;;  %v1192_v4 = vld [vmem:[%s4466_s2 + $0x728] sm:$0xff]  ;;  %v1161_v50 = vld [vmem:[%s4466_s2 + $0x630] sm:$0xff]  ;;  %v1162_v28 = vld [vmem:[%s4466_s2 + $0x638] sm:$0xff] }
 0x122   :  { %2848 = vmatpush3.bf16.msra.mxu1 %v2847_v19  ;;  %2818 = vmatprep.subr.bf16.mxu0 %v2817_v63  ;;  %v2857_v19 = vpack.c.bf16 %v1174_v11, %v1173_v6  ;;  %v1189_v63 = vld [vmem:[%s4466_s2 + $0x710] sm:$0xff]  ;;  %v923_v52 = vmax.f32 %v616_v15, 0.0  ;;  %v925_v58 = vmax.f32 %v705_v21, 0.0  ;;  %v940_v2 = vmax.f32 %v624_v33, 0.0  ;;  %v1179_v33 = vld [vmem:[%s4466_s2 + $0x6c0] sm:$0xff] }
 0x123   :  { %2850 = vmatprep.subr.bf16.mxu1 %v2849_v39  ;;  %v1190_v39 = vld [vmem:[%s4466_s2 + $0x718] sm:$0xff]  ;;  %v630_v9 = vadd.f32 %v4002_v41, %v3686_v22  ;;  %v942_v6 = vmax.f32 %v713_v37, 0.0  ;;  %v1177_v22 = vld [vmem:[%s4466_s2 + $0x6b0] sm:$0xff] }
 0x124   :  { %v2891_v57 = vpack.c.bf16 %v1190_v39, %v1189_v63  ;;  %v1178_v41 = vld [vmem:[%s4466_s2 + $0x6b8] sm:$0xff]  ;;  %v1209_v11 = vld [vmem:[%s4466_s2 + $0x7b0] sm:$0xff]  ;;  %v1180_v39 = vld [vmem:[%s4466_s2 + $0x6c8] sm:$0xff] }
 0x125   :  { %2820 = vmatpush3.bf16.msra.mxu0 %v2819_v16  ;;  %v1208_v16 = vld [vmem:[%s4466_s2 + $0x7a8] sm:$0xff]  ;;  %v956_v15 = vmax.f32 %v630_v9, 0.0  ;;  %v1193_v63 = vld [vmem:[%s4466_s2 + $0x730] sm:$0xff]  ;;  %v2897_v21 = vpack.c.bf16 %v1210_v12, %v1209_v11  ;;  %v1215_v11 = vld [vmem:[%s4466_s2 + $0x7e0] sm:$0xff] }
 0x126   :  { %2852 = vmatpush3.bf16.msra.mxu1 %v2851_v20  ;;  %2854 = vmatprep.subr.bf16.mxu0 %v2853_v59  ;;  %v622_v20 = vadd.f32 %v3939_v62, %v3643_v42  ;;  %v2861_v59 = vpack.c.bf16 %v1176_v45, %v1175_v44  ;;  %v1160_v62 = vld [vmem:[%s4466_s2 + $0x628] sm:$0xff]  ;;  %v2893_v8 = vpack.c.bf16 %v1208_v16, %v1207_v49  ;;  %v955_v44 = vmax.f32 %v4000_v35, 0.0  ;;  %v1163_v49 = vld [vmem:[%s4466_s2 + $0x640] sm:$0xff] }
 0x127   :  { %2886 = vmatprep.subr.bf16.mxu1 %v2885_v3  ;;  %v1191_v3 = vld [vmem:[%s4466_s2 + $0x720] sm:$0xff]  ;;  %v2863_v29 = vpack.c.bf16 %v1160_v62, %v1159_v56  ;;  %v2867_v45 = vpack.c.bf16 %v1162_v28, %v1161_v50  ;;  %v1164_v16 = vld [vmem:[%s4466_s2 + $0x648] sm:$0xff]  ;;  %v1213_v56 = vld [vmem:[%s4466_s2 + $0x7d0] sm:$0xff] }
 0x128   :  { %1624 = vmatmul.mubr.f32.vlgmr.msra.gmra.mrb[48].mxu0 %v907_v38  ;;  %v2895_v27 = vpack.c.bf16 %v1192_v4, %v1191_v3  ;;  %v941_v38 = vmax.f32 %v711_v61, 0.0  ;;  %v1195_v35 = vld [vmem:[%s4466_s2 + $0x740] sm:$0xff]  ;;  %v2871_v61 = vpack.c.bf16 %v1164_v16, %v1163_v49  ;;  %v1165_v62 = vld [vmem:[%s4466_s2 + $0x650] sm:$0xff]  ;;  %v1166_v3 = vld [vmem:[%s4466_s2 + $0x658] sm:$0xff]  ;;  %v796_v49 = vadd.f32 %v4076_v55, %v3645_v43 }
 0x129   :  { %1709 = vmatmul.mubr.f32.vlgmr.msra.gmra.mrb[48].mxu1 %v909_v1  ;;  %1628 = vmatprep.mubr.f32.mxu0 %v924_v32  ;;  %v958_v1 = vmax.f32 %v4023_v60, 0.0  ;;  %v1194_v32 = vld [vmem:[%s4466_s2 + $0x738] sm:$0xff]  ;;  %v1211_v60 = vld [vmem:[%s4466_s2 + $0x7c0] sm:$0xff]  ;;  %v1197_v4 = vld [vmem:[%s4466_s2 + $0x750] sm:$0xff]  ;;  %v885_v16 = vadd.f32 %v4078_v31, %v3645_v43  ;;  %v891_v55 = vadd.f32 %v4113_v54, %v3643_v42 }
 0x12a   :  { %1713 = vmatprep.mubr.f32.mxu1 %v926_v46  ;;  %2856 = vmatpush3.bf16.msra.mxu0 %v2855_v14  ;;  %v939_v14 = vmax.f32 %v622_v20, 0.0  ;;  %v957_v46 = vmax.f32 %v4009_v17, 0.0  ;;  %v1196_v20 = vld [vmem:[%s4466_s2 + $0x748] sm:$0xff]  ;;  %v1185_v28 = vld [vmem:[%s4466_s2 + $0x6f0] sm:$0xff] }
 0x12b   :  { %2888 = vmatpush3.bf16.msra.mxu1 %v2887_v18  ;;  %2858 = vmatprep.subr.bf16.mxu0 %v2857_v19  ;;  %v790_v18 = vadd.f32 %v4044_v47, %v3613_v25  ;;  %v2865_v19 = vpack.c.bf16 %v1178_v41, %v1177_v22  ;;  %v879_v47 = vadd.f32 %v4046_v5, %v3613_v25  ;;  %v1212_v5 = vld [vmem:[%s4466_s2 + $0x7c8] sm:$0xff]  ;;  %v1183_v22 = vld [vmem:[%s4466_s2 + $0x6e0] sm:$0xff] }
 0x12c   :  { %1629 = vmatmul.mubr.f32.gmra.mrb[50].mxu0 %v923_v52  ;;  %2890 = vmatprep.subr.bf16.mxu1 %v2889_v53  ;;  %v2899_v53 = vpack.c.bf16 %v1194_v32, %v1193_v63  ;;  %v2901_v17 = vpack.c.bf16 %v1212_v5, %v1211_v60  ;;  %v1184_v41 = vld [vmem:[%s4466_s2 + $0x6e8] sm:$0xff]  ;;  %v1186_v63 = vld [vmem:[%s4466_s2 + $0x6f8] sm:$0xff] }
 0x12d   :  { %1714 = vmatmul.mubr.f32.gmra.mrb[50].mxu1 %v925_v58  ;;  %1633 = vmatprep.mubr.f32.mxu0 %v940_v2  ;;  %v912_v37 = vmax.f32 %v790_v18, 0.0  ;;  %v914_v52 = vmax.f32 %v879_v47, 0.0  ;;  %v1214_v58 = vld [vmem:[%s4466_s2 + $0x7d8] sm:$0xff]  ;;  %v2903_v2 = vpack.c.bf16 %v1196_v20, %v1195_v35  ;;  %v1216_v12 = vld [vmem:[%s4466_s2 + $0x7e8] sm:$0xff]  ;;  %v1199_v18 = vld [vmem:[%s4466_s2 + $0x760] sm:$0xff]  ;;  %v928_v20 = vmax.f32 %v796_v49, 0.0 }
 0x12e   :  { %1718 = vmatprep.mubr.f32.mxu1 %v942_v6  ;;  %2860 = vmatpush3.bf16.msra.mxu0 %v2859_v10  ;;  %v2869_v10 = vpack.c.bf16 %v1180_v39, %v1179_v33  ;;  %v2905_v6 = vpack.c.bf16 %v1214_v58, %v1213_v56  ;;  %v1200_v50 = vld [vmem:[%s4466_s2 + $0x768] sm:$0xff]  ;;  %v1218_v47 = vld [vmem:[%s4466_s2 + $0x7f8] sm:$0xff]  ;;  %v2881_v33 = vpack.c.bf16 %v1186_v63, %v1185_v28  ;;  %v1169_v39 = vld [vmem:[%s4466_s2 + $0x670] sm:$0xff]  ;;  %v960_v56 = vmax.f32 %v4143_v40, 0.0 }
 0x12f   :  { %2892 = vmatpush3.bf16.msra.mxu1 %v2891_v57  ;;  %2862 = vmatprep.subr.bf16.mxu0 %v2861_v59  ;;  %v1181_v57 = vld [vmem:[%s4466_s2 + $0x6d0] sm:$0xff]  ;;  %v1182_v59 = vld [vmem:[%s4466_s2 + $0x6d8] sm:$0xff]  ;;  %v2911_v32 = vpack.c.bf16 %v1200_v50, %v1199_v18  ;;  %v962_v58 = vmax.f32 %v4155_v34, 0.0 }
 0x130   :  { %1634 = vmatmul.mubr.f32.gmra.mrb[52].mxu0 %v939_v14  ;;  %2894 = vmatprep.subr.bf16.mxu1 %v2893_v8  ;;  %v2873_v9 = vpack.c.bf16 %v1182_v59, %v1181_v57  ;;  %v1198_v8 = vld [vmem:[%s4466_s2 + $0x758] sm:$0xff]  ;;  %v2875_v14 = vpack.c.bf16 %v1166_v3, %v1165_v62  ;;  %v946_v59 = vmax.f32 %v891_v55, 0.0 }
 0x131   :  { %1719 = vmatmul.mubr.f32.gmra.mrb[52].mxu1 %v941_v38  ;;  %1638 = vmatprep.mubr.f32.mxu0 %v956_v15  ;;  %v1167_v38 = vld [vmem:[%s4466_s2 + $0x660] sm:$0xff]  ;;  %v1168_v15 = vld [vmem:[%s4466_s2 + $0x668] sm:$0xff]  ;;  %v1170_v60 = vld [vmem:[%s4466_s2 + $0x678] sm:$0xff] }
 0x132   :  { %1723 = vmatprep.mubr.f32.mxu1 %v958_v1  ;;  %2864 = vmatpush3.bf16.msra.mxu0 %v2863_v29  ;;  %v2907_v29 = vpack.c.bf16 %v1198_v8, %v1197_v4  ;;  %v1217_v1 = vld [vmem:[%s4466_s2 + $0x7f0] sm:$0xff] }
 0x133   :  { %2896 = vmatpush3.bf16.msra.mxu1 %v2895_v27  ;;  %2866 = vmatprep.subr.bf16.mxu0 %v2865_v19  ;;  %v2877_v27 = vpack.c.bf16 %v1184_v41, %v1183_v22  ;;  %v2909_v19 = vpack.c.bf16 %v1216_v12, %v1215_v11  ;;  %v2913_v5 = vpack.c.bf16 %v1218_v47, %v1217_v1 }
 0x134   :  { %1639 = vmatmul.mubr.f32.gmra.mrb[54].mxu0 %v955_v44  ;;  %2898 = vmatprep.subr.bf16.mxu1 %v2897_v21  ;;  %v2879_v21 = vpack.c.bf16 %v1168_v15, %v1167_v38  ;;  %v1201_v44 = vld [vmem:[%s4466_s2 + $0x770] sm:$0xff] }
 0x135   :  { %1724 = vmatmul.mubr.f32.gmra.mrb[54].mxu1 %v957_v46  ;;  %1793 = vmatprep.mubr.f32.mxu0 %v912_v37  ;;  %v2883_v46 = vpack.c.bf16 %v1170_v60, %v1169_v39  ;;  %v788_v37 = vadd.f32 %v4034_v24, %v3613_v25 }
 0x136   :  { %2868 = vmatpush3.bf16.msra.mxu0 %v2867_v45  ;;  %1878 = vmatprep.mubr.f32.mxu1 %v914_v52  ;;  %v1202_v45 = vld [vmem:[%s4466_s2 + $0x778] sm:$0xff]  ;;  %v794_v52 = vadd.f32 %v4066_v26, %v3645_v43  ;;  %v800_v26 = vadd.f32 %v4098_v48, %v3643_v42  ;;  %v959_v48 = vmax.f32 %v4137_v36, 0.0 }
 0x137   :  { %2900 = vmatpush3.bf16.msra.mxu1 %v2899_v53  ;;  %2870 = vmatprep.subr.bf16.mxu0 %v2869_v10  ;;  %v2915_v53 = vpack.c.bf16 %v1202_v45, %v1201_v44  ;;  %v877_v10 = vadd.f32 %v4042_v0, %v3613_v25  ;;  %v911_v35 = vmax.f32 %v788_v37, 0.0  ;;  %v802_v25 = vadd.f32 %v4108_v13, %v3643_v42 }
 0x138   :  { %2902 = vmatprep.subr.bf16.mxu1 %v2901_v17  ;;  %v883_v17 = vadd.f32 %v4074_v30, %v3645_v43  ;;  %v930_v0 = vmax.f32 %v885_v16, 0.0  ;;  %v927_v31 = vmax.f32 %v794_v52, 0.0  ;;  %v889_v43 = vadd.f32 %v4106_v51, %v3643_v42 }
 0x139   :  { %v913_v24 = vmax.f32 %v877_v10, 0.0  ;;  %v944_v30 = vmax.f32 %v802_v25, 0.0  ;;  %v943_v13 = vmax.f32 %v800_v26, 0.0  ;;  %v961_v42 = vmax.f32 %v4140_v23, 0.0 }
 0x13a   :  { %2872 = vmatpush3.bf16.msra.mxu0 %v2871_v61  ;;  %v929_v57 = vmax.f32 %v883_v17, 0.0  ;;  %v945_v54 = vmax.f32 %v889_v43, 0.0  ;;  %v2995_v51 = vmov 0.0|0.0  }
 0x13b   :  { %2904 = vmatpush3.bf16.msra.mxu1 %v2903_v2  ;;  %2874 = vmatprep.subr.bf16.mxu0 %v2873_v9 }
 0x13c   :  { %2906 = vmatprep.subr.bf16.mxu1 %v2905_v6 }
 0x13e   :  { %2876 = vmatpush3.bf16.msra.mxu0 %v2875_v14 }
 0x13f   :  { %2908 = vmatpush3.bf16.msra.mxu1 %v2907_v29  ;;  %2878 = vmatprep.subr.bf16.mxu0 %v2877_v27 }
 0x140   :  { %2910 = vmatprep.subr.bf16.mxu1 %v2909_v19 }
 0x142   :  { %2880 = vmatpush3.bf16.msra.mxu0 %v2879_v21 }
 0x143   :  { %2912 = vmatpush3.bf16.msra.mxu1 %v2911_v32  ;;  %2882 = vmatprep.subr.bf16.mxu0 %v2881_v33 }
 0x144   :  { %2914 = vmatprep.subr.bf16.mxu1 %v2913_v5 }
 0x146   :  { %2884 = vmatpush3.bf16.msra.mxu0 %v2883_v46 }
 0x147   :  { %2916 = vmatpush3.bf16.msra.mxu1 %v2915_v53  ;;  %2917 = vmatprep.subr.bf16.mxu0 %v2995_v51 }
 0x149   :  { %1794 = vmatmul.mubr.f32.vlgmr.msra.gmra.mrb[56].mxu0 %v911_v35 }
 0x14a   :  { %1879 = vmatmul.mubr.f32.vlgmr.msra.gmra.mrb[56].mxu1 %v913_v24  ;;  %1798 = vmatprep.mubr.f32.mxu0 %v928_v20 }
 0x14b   :  { %1883 = vmatprep.mubr.f32.mxu1 %v930_v0 }
 0x14d   :  { %1799 = vmatmul.mubr.f32.gmra.mrb[58].mxu0 %v927_v31 }
 0x14e   :  { %1884 = vmatmul.mubr.f32.gmra.mrb[58].mxu1 %v929_v57  ;;  %1803 = vmatprep.mubr.f32.mxu0 %v944_v30 }
 0x14f   :  { %1888 = vmatprep.mubr.f32.mxu1 %v946_v59 }
 0x151   :  { %1804 = vmatmul.mubr.f32.gmra.mrb[60].mxu0 %v943_v13 }
 0x152   :  { %1889 = vmatmul.mubr.f32.gmra.mrb[60].mxu1 %v945_v54  ;;  %1808 = vmatprep.mubr.f32.mxu0 %v960_v56 }
 0x153   :  { %1893 = vmatprep.mubr.f32.mxu1 %v962_v58 }
 0x155   :  { %1809 = vmatmul.mubr.f32.gmra.mrb[62].mxu0 %v959_v48 }
 0x156   :  { %1894 = vmatmul.mubr.f32.gmra.mrb[62].mxu1 %v961_v42  ;;  %2578 = vmatprep.mubr.msk.f32.mxu0 %vm2996_vm4, %v2992_v7 }
 0x1ba   :  { %v2245_v61 = vpop.f32.mrb[32].mxu0 }
 0x1bb   :  { %v2289_v40 = vpop.f32.mrb[32].mxu1  ;;  %v2246_v2 = vpop.f32.mrb[33].mxu0 }
 0x1bc   :  { %v2247_v34 = vadd.f32 %v2246_v2, %v2245_v61  ;;  %v2290_v9 = vpop.f32.mrb[33].mxu1 }
 0x1bd   :  { %v2291_v62 = vadd.f32 %v2290_v9, %v2289_v40 }
 0x1be   :  { %v2248_v3 = vpop.f32.mrb[34].mxu0 }
 0x1bf   :  { %v1371_v4 = vadd.f32 %v2291_v62, %v2247_v34  ;;  %v2292_v36 = vpop.f32.mrb[34].mxu1  ;;  %v2249_v6 = vpop.f32.mrb[35].mxu0 }
 0x1c0   :  { %v2250_v8 = vadd.f32 %v2249_v6, %v2248_v3  ;;  %v2293_v23 = vpop.f32.mrb[35].mxu1 }
 0x1c1   :  { %v2294_v22 = vadd.f32 %v2293_v23, %v2292_v36 }
 0x1c2   :  { %v2251_v41 = vpop.f32.mrb[36].mxu0 }
 0x1c3   :  { %v1376_v11 = vadd.f32 %v2294_v22, %v2250_v8  ;;  %v2295_v12 = vpop.f32.mrb[36].mxu1  ;;  %v2252_v14 = vpop.f32.mrb[37].mxu0 }
 0x1c4   :  { %v2253_v29 = vadd.f32 %v2252_v14, %v2251_v41  ;;  %v2296_v27 = vpop.f32.mrb[37].mxu1 }
 0x1c5   :  { %v2297_v38 = vadd.f32 %v2296_v27, %v2295_v12 }
 0x1c6   :  { %v2254_v15 = vpop.f32.mrb[38].mxu0 }
 0x1c7   :  { %v1381_v18 = vadd.f32 %v2297_v38, %v2253_v29  ;;  %v2298_v19 = vpop.f32.mrb[38].mxu1  ;;  %v2255_v50 = vpop.f32.mrb[39].mxu0 }
 0x1c8   :  { %v2256_v28 = vadd.f32 %v2255_v50, %v2254_v15  ;;  %v2299_v63 = vpop.f32.mrb[39].mxu1 }
 0x1c9   :  { %v2300_v1 = vadd.f32 %v2299_v63, %v2298_v19 }
 0x1cb   :  { %v1386_v47 = vadd.f32 %v2300_v1, %v2256_v28 }
 0x1da   :  { %v2333_v21 = vpop.f32.mrb[40].mxu0 }
 0x1db   :  { %v2377_v32 = vpop.f32.mrb[40].mxu1  ;;  %v2334_v33 = vpop.f32.mrb[41].mxu0 }
 0x1dc   :  { %v2335_v39 = vadd.f32 %v2334_v33, %v2333_v21  ;;  %v2378_v60 = vpop.f32.mrb[41].mxu1 }
 0x1dd   :  { %v2379_v5 = vadd.f32 %v2378_v60, %v2377_v32 }
 0x1de   :  { %v1456_v44 = vadd.f32 %v2335_v39, %v1371_v4  ;;  %v2336_v45 = vpop.f32.mrb[42].mxu0 }
 0x1df   :  { %v2380_v46 = vpop.f32.mrb[42].mxu1  ;;  %v2337_v37 = vpop.f32.mrb[43].mxu0 }
 0x1e0   :  { %v1541_v53 = vadd.f32 %v2379_v5, %v1456_v44  ;;  %v2338_v10 = vadd.f32 %v2337_v37, %v2336_v45  ;;  %v2381_v49 = vpop.f32.mrb[43].mxu1 }
 0x1e1   :  { %v2382_v16 = vadd.f32 %v2381_v49, %v2380_v46 }
 0x1e2   :  { %v1461_v35 = vadd.f32 %v2338_v10, %v1376_v11  ;;  %v2339_v52 = vpop.f32.mrb[44].mxu0 }
 0x1e3   :  { %v2383_v24 = vpop.f32.mrb[44].mxu1  ;;  %v2340_v17 = vpop.f32.mrb[45].mxu0 }
 0x1e4   :  { %v1546_v20 = vadd.f32 %v2382_v16, %v1461_v35  ;;  %v2341_v25 = vadd.f32 %v2340_v17, %v2339_v52  ;;  %v2384_v0 = vpop.f32.mrb[45].mxu1 }
 0x1e5   :  { %v2385_v55 = vadd.f32 %v2384_v0, %v2383_v24 }
 0x1e6   :  { %v1466_v31 = vadd.f32 %v2341_v25, %v1381_v18  ;;  %v2342_v26 = vpop.f32.mrb[46].mxu0 }
 0x1e7   :  { %v2386_v57 = vpop.f32.mrb[46].mxu1  ;;  %v2343_v43 = vpop.f32.mrb[47].mxu0 }
 0x1e8   :  { %v1551_v30 = vadd.f32 %v2385_v55, %v1466_v31  ;;  %v2344_v59 = vadd.f32 %v2343_v43, %v2342_v26  ;;  %v2387_v13 = vpop.f32.mrb[47].mxu1 }
 0x1e9   :  { %v2388_v54 = vadd.f32 %v2387_v13, %v2386_v57 }
 0x1ea   :  { %v1471_v56 = vadd.f32 %v2344_v59, %v1386_v47 }
 0x1ec   :  { %v1556_v58 = vadd.f32 %v2388_v54, %v1471_v56 }
 0x1fb   :  { %v2421_v48 = vpop.f32.mrb[48].mxu0 }
 0x1fc   :  { %v2465_v42 = vpop.f32.mrb[48].mxu1  ;;  %v2422_v61 = vpop.f32.mrb[49].mxu0 }
 0x1fd   :  { %v2423_v40 = vadd.f32 %v2422_v61, %v2421_v48  ;;  %v2466_v2 = vpop.f32.mrb[49].mxu1 }
 0x1fe   :  { %v2467_v34 = vadd.f32 %v2466_v2, %v2465_v42  ;;  %v1899_v2 = vld [vmem:[%s4469_s5] sm:$0x3f] }
 0x1ff   :  { %v1626_v9 = vadd.f32 %v2423_v40, %v1541_v53  ;;  %v2424_v62 = vpop.f32.mrb[50].mxu0 }
 0x200   :  { %v2468_v3 = vpop.f32.mrb[50].mxu1  ;;  %v2425_v4 = vpop.f32.mrb[51].mxu0 }
 0x201   :  { %v1711_v36 = vadd.f32 %v2467_v34, %v1626_v9  ;;  %v2426_v6 = vadd.f32 %v2425_v4, %v2424_v62  ;;  %v2469_v8 = vpop.f32.mrb[51].mxu1  ;;  %v2075_v34 = vld [vmem:[%s4465_s1] sm:$0xff]  ;;  %v2076_v9 = vld [vmem:[%s4465_s1 + $0x8] sm:$0xff]  ;;  %v2078_v62 = vld [vmem:[%s4465_s1 + $0x18] sm:$0xff] }
 0x202   :  { %v2470_v23 = vadd.f32 %v2469_v8, %v2468_v3  ;;  %v2079_v3 = vld [vmem:[%s4465_s1 + $0x20] sm:$0xff]  ;;  %v2080_v4 = vld [vmem:[%s4465_s1 + $0x28] sm:$0xff] }
 0x203   :  { %v1631_v22 = vadd.f32 %v2426_v6, %v1546_v20  ;;  %v2427_v41 = vpop.f32.mrb[52].mxu0  ;;  %v2082_v6 = vadd.f32 1.0, %v2076_v9 }
 0x204   :  { %v2471_v11 = vpop.f32.mrb[52].mxu1  ;;  %v2428_v12 = vpop.f32.mrb[53].mxu0 }
 0x205   :  { %v1716_v14 = vadd.f32 %v2470_v23, %v1631_v22  ;;  %v2429_v29 = vadd.f32 %v2428_v12, %v2427_v41  ;;  %v2472_v27 = vpop.f32.mrb[53].mxu1  ;;  %v2084_v23 = vadd.f32 1.0, %v2078_v62  ;;  %v2085_v22 = vadd.f32 1.0, %v2079_v3 }
 0x206   :  { %v2473_v38 = vadd.f32 %v2472_v27, %v2471_v11  ;;  %v2086_v41 = vadd.f32 1.0, %v2080_v4  ;;  %v2088_v12 = vmul.f32 127.5, %v2082_v6 }
 0x207   :  { %v1636_v15 = vadd.f32 %v2429_v29, %v1551_v30  ;;  %v2430_v18 = vpop.f32.mrb[54].mxu0  ;;  %v2090_v29 = vmul.f32 127.5, %v2084_v23  ;;  %v2091_v27 = vmul.f32 127.5, %v2085_v22 }
 0x208   :  { %v2474_v19 = vpop.f32.mrb[54].mxu1  ;;  %v2431_v50 = vpop.f32.mrb[55].mxu0 }
 0x209   :  { %v1721_v28 = vadd.f32 %v2473_v38, %v1636_v15  ;;  %v2432_v63 = vadd.f32 %v2431_v50, %v2430_v18  ;;  %v2475_v1 = vpop.f32.mrb[55].mxu1  ;;  %v2092_v38 = vmul.f32 127.5, %v2086_v41  ;;  %v2094_v18 = vmax.f32 %v2088_v12, 0.0 }
 0x20a   :  { %v2476_v47 = vadd.f32 %v2475_v1, %v2474_v19  ;;  %v2096_v50 = vmax.f32 %v2090_v29, 0.0 }
 0x20b   :  { %v1641_v21 = vadd.f32 %v2432_v63, %v1556_v58  ;;  %v2098_v63 = vmax.f32 %v2092_v38, 0.0 }
 0x20d   :  { %v1726_v32 = vadd.f32 %v2476_v47, %v1641_v21  ;;  %v2100_v47 = vmin.f32 %v2094_v18, 255.0 }
 0x21c   :  { %v2509_v33 = vpop.f32.mrb[56].mxu0 }
 0x21d   :  { %v2553_v39 = vpop.f32.mrb[56].mxu1  ;;  %v2510_v60 = vpop.f32.mrb[57].mxu0 }
 0x21e   :  { %v2511_v5 = vadd.f32 %v2510_v60, %v2509_v33  ;;  %v2554_v44 = vpop.f32.mrb[57].mxu1 }
 0x21f   :  { %v2555_v45 = vadd.f32 %v2554_v44, %v2553_v39  ;;  %v2104_v39 = vmin.f32 %v2098_v63, 255.0 }
 0x220   :  { %v1796_v46 = vadd.f32 %v2511_v5, %v1711_v36  ;;  %v2512_v37 = vpop.f32.mrb[58].mxu0  ;;  %v2081_v36 = vadd.f32 1.0, %v2075_v34  ;;  %v2106_v5 = vfloor.f32 %v2100_v47 }
 0x221   :  { %v2556_v53 = vpop.f32.mrb[58].mxu1  ;;  %v2513_v10 = vpop.f32.mrb[59].mxu0 }
 0x222   :  { %v1881_v49 = vadd.f32 %v2555_v45, %v1796_v46  ;;  %v2514_v16 = vadd.f32 %v2513_v10, %v2512_v37  ;;  %v2557_v35 = vpop.f32.mrb[59].mxu1  ;;  %v2087_v11 = vmul.f32 127.5, %v2081_v36  ;;  %v2110_v37 = vfloor.f32 %v2104_v39 }
 0x223   :  { %v2558_v52 = vadd.f32 %v2557_v35, %v2556_v53  ;;  %v2112_v10 = vmul.f32 0.007843138, %v2106_v5 }
 0x224   :  { %v1801_v24 = vadd.f32 %v2514_v16, %v1716_v14  ;;  %v2515_v17 = vpop.f32.mrb[60].mxu0  ;;  %v2093_v15 = vmax.f32 %v2087_v11, 0.0 }
 0x225   :  { %v2559_v20 = vpop.f32.mrb[60].mxu1  ;;  %v2516_v25 = vpop.f32.mrb[61].mxu0 }
 0x226   :  { %v1886_v0 = vadd.f32 %v2558_v52, %v1801_v24  ;;  %v2517_v55 = vadd.f32 %v2516_v25, %v2515_v17  ;;  %v2560_v31 = vpop.f32.mrb[61].mxu1  ;;  %v2099_v1 = vmin.f32 %v2093_v15, 255.0  ;;  %v2116_v52 = vmul.f32 0.007843138, %v2110_v37 }
 0x227   :  { %v2561_v26 = vadd.f32 %v2560_v31, %v2559_v20  ;;  %v2208_v17 = vadd.f32 -1.0, %v2112_v10 }
 0x228   :  { %v2918_v57 = vpack.c.bf16 %v1886_v0, %v1881_v49  ;;  %v1806_v43 = vadd.f32 %v2517_v55, %v1721_v28  ;;  %v2518_v30 = vpop.f32.mrb[62].mxu0  ;;  %v2097_v28 = vmax.f32 %v2091_v27, 0.0  ;;  %v2105_v60 = vfloor.f32 %v2099_v1 }
 0x229   :  { %v2562_v59 = vpop.f32.mrb[62].mxu1  ;;  %v2519_v13 = vpop.f32.mrb[63].mxu0  ;;  %v2212_v55 = vadd.f32 -1.0, %v2116_v52  ;;  %2124 = vst [vmem:[#allocation4 + $0x8] sm:$0xff] %v2208_v17 }
 0x22a   :  { %v1891_v54 = vadd.f32 %v2561_v26, %v1806_v43  ;;  %v2520_v56 = vadd.f32 %v2519_v13, %v2518_v30  ;;  %v2563_v58 = vpop.f32.mrb[63].mxu1  ;;  %2919 = vmatpush3.bf16.msra.mxu0 %v2918_v57  ;;  %v2103_v33 = vmin.f32 %v2097_v28, 255.0  ;;  %v2111_v53 = vmul.f32 0.007843138, %v2105_v60 }
 0x22b   :  { %v2564_v48 = vadd.f32 %v2563_v58, %v2562_v59  ;;  %2920 = vmatprep.subr.bf16.mxu0 %v2995_v51  ;;  %v2077_v51 = vld [vmem:[%s4465_s1 + $0x10] sm:$0xff]  ;;  %s2997_s1 = smov [#allocation4]   ;;  %2128 = vst [vmem:[#allocation4 + $0x28] sm:$0xff] %v2212_v55 }
 0x22c   :  { %v1811_v42 = vadd.f32 %v2520_v56, %v1726_v32  ;;  %v2083_v8 = vadd.f32 1.0, %v2077_v51  ;;  %v2102_v32 = vmin.f32 %v2096_v50, 255.0  ;;  %v2109_v46 = vfloor.f32 %v2103_v33  ;;  %s2145_s23 = sshll.u32 %s2997_s1, 4  ;;  %s2146_s23 = int_to_ptr.vmem [resolvable:$true] %s2145_s23 }
 0x22d   :  { %v2207_v24 = vadd.f32 -1.0, %v2111_v53  ;;  %s2944_s24 = scalar_lea.vmem %s2146_s23, 768  ;;  %p2949_p1 = scmp.lt.s32.totalorder %s2146_s23, %s2146_s23 }
 0x22e   :  { %v1896_v61 = vadd.f32 %v2564_v48, %v1811_v42  ;;  %v2089_v14 = vmul.f32 127.5, %v2083_v8  ;;  %v2108_v45 = vfloor.f32 %v2102_v32  ;;  %v2115_v35 = vmul.f32 0.007843138, %v2109_v46  ;;  %p2945_p0 = scmp.ne.s32.totalorder %s2146_s23, %s2944_s24  ;;  %p2950_p2 = scmp.lt.s32.totalorder %s2944_s24, %s2944_s24 }
 0x22f   :  { %2123 = vst [vmem:[#allocation4] sm:$0xff] %v2207_v24 }
 0x230   :  { %v2921_v40 = vpack.c.bf16 %v1896_v61, %v1891_v54  ;;  %v2095_v19 = vmax.f32 %v2089_v14, 0.0  ;;  %v2114_v16 = vmul.f32 0.007843138, %v2108_v45  ;;  %v2211_v0 = vadd.f32 -1.0, %v2115_v35  ;;  %p2951_p3 = por %p2950_p2, %p2949_p1 }
 0x232   :  { %2922 = vmatpush3.bf16.msra.mxu0 %v2921_v40  ;;  %v2101_v21 = vmin.f32 %v2095_v19, 255.0  ;;  %v2210_v25 = vadd.f32 -1.0, %v2114_v16  ;;  %2127 = vst [vmem:[#allocation4 + $0x20] sm:$0xff] %v2211_v0  ;;  %p2952_p4 = pnand %p2951_p3, %p2945_p0 }
 0x234   :  { %v2107_v44 = vfloor.f32 %v2101_v21  ;;  %2126 = vst [vmem:[#allocation4 + $0x18] sm:$0xff] %v2210_v25 }
 0x235   :  { %2579 = vmatmul.mubr.msk.f32.vlgmr.msra.gmra.mrb[64].mxu0 %vm1906_vm5, %v1899_v2 }
 0x236   :  { %v2113_v49 = vmul.f32 0.007843138, %v2107_v44 }
 0x238   :  { %v2209_v20 = vadd.f32 -1.0, %v2113_v49 }
 0x23a   :  { %2125 = vst [vmem:[#allocation4 + $0x10] sm:$0xff] %v2209_v20 }
 0x23b   :  { %2955 = shalt.err (!%p2952_p4)
}
 0x23c   :  { %s2956_s27 = scalar_lea.hbm %s4473_s9, 768 }
 0x23d   :  { %p2957_p5 = scmp.ne.s32.totalorder %s4473_s9, %s2956_s27  ;;  %p2960_p6 = scmp.lt.u32.totalorder %s2956_s27, %s4473_s9 }
 0x23f   :  { %p2962_p7 = pnand %p2960_p6, %p2957_p5 }
 0x241   :  { %2965 = shalt.err (!%p2962_p7)
}
 0x242   :  { %2148 = dma.vmem_to_hbm [thread:$0]  %s2146_s23, 768, %s4473_s9, [#allocation5]   ;;  %v1904_v31 = vpop.permute.xlu0 %1903  ;;  %vm1980_vm6 = vcmask 61440   ;;  %v2012_v19 = vld [vmem:[%s4471_s7] sm:$0x1f]  ;;  %v2021_v33 = vlaneseq  ;;  %vm2068_vm9 = vcmask 1040384  }
 0x243   :  { %vm2070_vm10 = vcmask 1041408   ;;  %s2998_s7 = smov [#allocation2]   ;;  %vm2073_vm11 = vcmask 60416  }
 0x244   :  { %v2022_v46 = vshrl.u32 %v2021_v33, 7  ;;  %s2135_s12 = sshll.u32 %s2998_s7, 4  ;;  %s2136_s12 = int_to_ptr.vmem [resolvable:$true] %s2135_s12 }
 0x245   :  { %s2966_s2 = scalar_lea.vmem %s2136_s12, 64  ;;  %p2971_p9 = scmp.lt.s32.totalorder %s2136_s12, %s2136_s12 }
 0x246   :  { %v2023_v35 = vcvt.s32.f32 %v2022_v46  ;;  %p2967_p8 = scmp.ne.s32.totalorder %s2136_s12, %s2966_s2  ;;  %p2972_p10 = scmp.lt.s32.totalorder %s2966_s2, %s2966_s2 }
 0x248   :  { %p2973_p11 = por %p2972_p10, %p2971_p9 }
 0x24a   :  { %p2974_p12 = pnand %p2973_p11, %p2967_p8 }
 0x308   :  { %v1976_v26 = vpop.f32.mrb[64].mxu0 }
 0x309   :  { %v1977_v57 = vadd.f32 %v1976_v26, %v1904_v31  ;;  %v2580_v43 = vpop.f32.mrb[65].mxu0 }
 0x30b   :  { %v1981_v30 = vsel %vm1980_vm6, %v1977_v57, -inf  ;;  %v2045_v59 = vand.u32 2147483647, %v1977_v57  ;;  %v2044_v6 = vmin.f32 %v1977_v57, 0.0 }
 0x30c   :  { %v1982_v13 = vrot.slane %v1981_v30, 4 }
 0x30d   :  { %v2046_v54 = vsub.f32 0.0, %v2045_v59 }
 0x30e   :  { %v1983_v56 = vmax.f32 %v1981_v30, %v1982_v13 }
 0x30f   :  { %v2047_v58 = vmul.f32 1.442695, %v2046_v54 }
 0x310   :  { %v1984_v48 = vrot.slane %v1983_v56, 2 }
 0x311   :  { %2932 = vpow2.f32 %v2047_v58 }
 0x312   :  { %v1985_v42 = vmax.f32 %v1983_v56, %v1984_v48 }
 0x314   :  { %v1986_v61 = vrot.slane %v1985_v42, 1 }
 0x316   :  { %v1987_v40 = vmax.f32 %v1985_v42, %v1986_v61 }
 0x318   :  { %v1988_v2 = vsub.f32 %v1977_v57, %v1987_v40 }
 0x31a   :  { %v1989_v34 = vmul.f32 1.442695, %v1988_v2 }
 0x31b   :  { %v2933_v9 = vpop.eup %2932 }
 0x31c   :  { %2934 = vpow2.f32 %v1989_v34  ;;  %v2049_v51 = vadd.f32 1.0, %v2933_v9 }
 0x31e   :  { %2936 = vlog2.f32 %v2049_v51 }
 0x326   :  { %v2935_v62 = vpop.eup %2934 }
 0x327   :  { %v1991_v3 = vsel %vm1980_vm6, %v2935_v62, 0.0 }
 0x328   :  { %v2937_v4 = vpop.eup %2936  ;;  %v1992_v36 = vrot.slane %v1991_v3, 4 }
 0x329   :  { %v2051_v8 = vmul.f32 0.6931472, %v2937_v4 }
 0x32a   :  { %v1993_v23 = vadd.f32 %v1992_v36, %v1991_v3 }
 0x32b   :  { %v2052_v22 = vsub.f32 %v2044_v6, %v2051_v8 }
 0x32c   :  { %v1994_v41 = vrot.slane %v1993_v23, 2 }
 0x32d   :  { %v2053_v27 = vmul.f32 1.442695, %v2052_v22 }
 0x32e   :  { %v1995_v11 = vadd.f32 %v1994_v41, %v1993_v23 }
 0x330   :  { %v1996_v12 = vrot.slane %v1995_v11, 1 }
 0x332   :  { %v1997_v14 = vadd.f32 %v1996_v12, %v1995_v11 }
 0x334   :  { %2938 = vrcp.f32 %v1997_v14 }
 0x335   :  { %2940 = vlog2.f32 %v1997_v14 }
 0x336   :  { %2942 = vpow2.f32 %v2053_v27 }
 0x33e   :  { %v2939_v29 = vpop.eup %2938 }
 0x33f   :  { %v2941_v38 = vpop.eup %2940  ;;  %v1999_v15 = vmul.f32 %v2939_v29, %v2935_v62 }
 0x340   :  { %v2001_v18 = vmul.f32 0.6931472, %v2941_v38  ;;  %v2943_v45 = vpop.eup %2942 }
 0x341   :  { %v2055_v16 = vmul.f32 %v2943_v45, %v2052_v22  ;;  %v2066_v62 = vrot.slane %v2943_v45, 2 }
 0x342   :  { %v2002_v50 = vsub.f32 %v1988_v2, %v2001_v18 }
 0x343   :  { %v2056_v20 = vsub.f32 0.0, %v2055_v16 }
 0x344   :  { %v2003_v28 = vmul.f32 %v2002_v50, %v1999_v15  ;;  %v2013_v63 = vadd.f32 %v2012_v19, %v2002_v50 }
 0x346   :  { %v2004_v1 = vsel %vm1980_vm6, %v2003_v28, 0.0  ;;  %v2014_v47 = vsel %vm1980_vm6, %v2013_v63, -inf }
 0x347   :  { %v2005_v21 = vrot.slane %v2004_v1, 4  ;;  %v2015_v32 = vrot.slane %v2014_v47, 4 }
 0x349   :  { %v2016_v39 = vmax.f32 %v2014_v47, %v2015_v32  ;;  %v2006_v60 = vadd.f32 %v2005_v21, %v2004_v1 }
 0x34b   :  { %v2017_v5 = vrot.slane %v2016_v39, 2  ;;  %v2007_v44 = vrot.slane %v2006_v60, 2 }
 0x34d   :  { %v2008_v37 = vadd.f32 %v2007_v44, %v2006_v60  ;;  %v2018_v53 = vmax.f32 %v2016_v39, %v2017_v5 }
 0x34f   :  { %v2009_v10 = vrot.slane %v2008_v37, 1  ;;  %v2019_v49 = vrot.slane %v2018_v53, 1 }
 0x351   :  { %v2010_v52 = vadd.f32 %v2009_v10, %v2008_v37  ;;  %v2020_v24 = vmax.f32 %v2018_v53, %v2019_v49 }
 0x353   :  { %v2011_v17 = vsub.f32 0.0, %v2010_v52  ;;  %vm2024_vm7 = vcmp.ge.f32.partialorder %v2013_v63, %v2020_v24 }
 0x354   :  { %v2025_v25 = vsel %vm2024_vm7, %v2023_v35, 5.0 }
 0x355   :  { %v2026_v0 = vsel %vm1980_vm6, %v2025_v25, inf  ;;  %v2058_v55 = vadd.f32 %v2056_v20, %v2011_v17 }
 0x356   :  { %v2027_v31 = vrot.slane %v2026_v0, 4 }
 0x357   :  { %v2063_v51 = vrot.slane %v2058_v55, 4 }
 0x358   :  { %v2028_v26 = vmin.f32 %v2026_v0, %v2027_v31 }
 0x35a   :  { %v2029_v57 = vrot.slane %v2028_v26, 2 }
 0x35c   :  { %v2030_v43 = vmin.f32 %v2028_v26, %v2029_v57 }
 0x35e   :  { %v2031_v30 = vrot.slane %v2030_v43, 1 }
 0x360   :  { %v2032_v59 = vmin.f32 %v2030_v43, %v2031_v30 }
 0x362   :  { %vm2033_vm8 = vcmp.eq.f32.partialorder %v2023_v35, %v2032_v59 }
 0x363   :  { %v2206_v13 = vsel %vm2033_vm8, 1.0, %v2992_v7 }
 0x364   :  { %v2036_v54 = vmul.f32 %v2206_v13, %v2002_v50 }
 0x366   :  { %v2037_v56 = vsel %vm1980_vm6, %v2036_v54, 0.0 }
 0x367   :  { %v2038_v58 = vrot.slane %v2037_v56, 4 }
 0x369   :  { %v2039_v48 = vadd.f32 %v2038_v58, %v2037_v56 }
 0x36b   :  { %v2040_v42 = vrot.slane %v2039_v48, 2 }
 0x36d   :  { %v2041_v61 = vadd.f32 %v2040_v42, %v2039_v48 }
 0x36f   :  { %v2042_v40 = vrot.slane %v2041_v61, 1 }
 0x371   :  { %v2043_v2 = vadd.f32 %v2042_v40, %v2041_v61 }
 0x373   :  { %v2057_v34 = vadd.f32 %v2052_v22, %v2043_v2 }
 0x375   :  { %v2060_v9 = vrot.slane %v2057_v34, 5 }
 0x377   :  { %v2069_v3 = vsel %vm2068_vm9, %v2060_v9, %v2063_v51 }
 0x378   :  { %v2071_v7 = vsel %vm2070_vm10, %v2069_v3, %v2032_v59 }
 0x379   :  { %v2072_v4 = vsel %vm138_vm0, %v2071_v7, %v2066_v62 }
 0x37a   :  { %2074 = vst.msk [vmem:[#allocation2] sm:$0xf] %vm2073_vm11, %v2072_v4 }
 0x37b   :  { %2977 = shalt.err (!%p2974_p12)
}
 0x37c   :  { %s2978_s13 = scalar_lea.hbm %s4472_s8, 64 }
 0x37d   :  { %p2979_p13 = scmp.ne.s32.totalorder %s4472_s8, %s2978_s13  ;;  %p2982_p0 = scmp.lt.u32.totalorder %s2978_s13, %s4472_s8 }
 0x37f   :  { %p2984_p1 = pnand %p2982_p0, %p2979_p13 }
 0x381   :  { %2987 = shalt.err (!%p2984_p1)
}
 0x382   :  { %2138 = dma.vmem_to_hbm [thread:$0]  %s2136_s12, 64, %s4472_s8, [#allocation3]  }
 0x383   :  { %2988 = dma.done.wait [#allocation3], 64  }
 0x384   :  { %2989 = vsyncadd [#allocation3], 4294967232 }
 0x385   :  { %2990 = dma.done.wait [#allocation5], 768  }
 0x386   :  { %2991 = vsyncadd [#allocation5], 4294966528 }
 0x387   :  { %2155 = vsyncpa [#allocation3], 1 }
 0x388   :  { %2156 = vsyncpa [#allocation5], 1 }

</bundles_post_ra>
